<compile_context>
chip_gen: v7x
topology: tpu7x:2x2x1
jax: 0.10.0
libtpu: 0.0.40
codegen_flags: <defaults>
</compile_context>

<pallas_src>
import functools
import math

import jax
import jax.numpy as jnp
from jax.experimental import pallas as pl
from jax.experimental.pallas import tpu as pltpu

# Small but TPU-friendly toy config (hidden / intermediate multiples of 128).
HIDDEN = 128
NUM_HEADS = 4
HEAD_DIM = HIDDEN // NUM_HEADS      # 32
INTERMEDIATE = 256
EPS = 1e-6


def _rmsnorm_f32(x_f32, w_f32):
    var = jnp.mean(x_f32 * x_f32, axis=-1, keepdims=True)
    return x_f32 * jax.lax.rsqrt(var + EPS) * w_f32


def encoder_layer_kernel(x_ref, inw_ref, postw_ref,
                         wqkv_ref, wo_ref, wgu_ref, wd_ref,
                         out_ref, *, num_heads):
    seq, hidden = x_ref.shape                 # (S, H) -- one sequence per program
    head_dim = hidden // num_heads
    inter = wd_ref.shape[0]                   # I

    x = x_ref[...].astype(jnp.float32)        # residual kept in f32

    # ---- input RMSNorm (f32, full 128-lane width) ----
    h = _rmsnorm_f32(x, inw_ref[...].astype(jnp.float32))                 # (S, H)

    # ---- fused QKV projection: one (S,H)@(H,3H) MXU push ----
    qkv = jnp.dot(h.astype(jnp.bfloat16), wqkv_ref[...],
                  preferred_element_type=jnp.float32)                     # (S, 3H)
    # static lane slices at 128-column boundaries
    q2 = qkv[:, 0:hidden].astype(jnp.bfloat16)                            # (S, H)
    k2 = qkv[:, hidden:2 * hidden].astype(jnp.bfloat16)
    v2 = qkv[:, 2 * hidden:3 * hidden].astype(jnp.bfloat16)

    # per-head regroup (column c = head*head_dim + d, PyTorch concat-head order)
    q3 = jnp.stack([q2[:, i * head_dim:(i + 1) * head_dim]
                    for i in range(num_heads)], axis=0)                   # (NH,S,hd)
    k3 = jnp.stack([k2[:, i * head_dim:(i + 1) * head_dim]
                    for i in range(num_heads)], axis=0)
    v3 = jnp.stack([v2[:, i * head_dim:(i + 1) * head_dim]
                    for i in range(num_heads)], axis=0)

    # ---- attention (1/sqrt(hd) already folded into Wq; softmax in f32) ----
    s = jnp.einsum("hqd,hkd->hqk", q3, k3,
                   preferred_element_type=jnp.float32)                    # (NH,S,S)
    s = s - jnp.max(s, axis=-1, keepdims=True)
    p = jnp.exp(s)
    p = p * pl.reciprocal(jnp.sum(p, axis=-1, keepdims=True), approx=True)
    ctx = jnp.einsum("hqk,hkd->hqd", p.astype(jnp.bfloat16), v3,
                     preferred_element_type=jnp.float32)                  # (NH,S,hd)

    # ---- output projection: concat heads along lanes, ONE (S,H)@(H,H) dot ----
    ctx2 = jnp.concatenate([ctx[i] for i in range(num_heads)], axis=-1)   # (S, H)
    attn = jnp.dot(ctx2.astype(jnp.bfloat16), wo_ref[...],
                   preferred_element_type=jnp.float32)                    # (S, H)

    h1 = attn + x                                                         # residual 1

    # ---- post-attention RMSNorm + SwiGLU MLP (fused gate/up matmul) ----
    h2 = _rmsnorm_f32(h1, postw_ref[...].astype(jnp.float32))
    gu = jnp.dot(h2.astype(jnp.bfloat16), wgu_ref[...],
                 preferred_element_type=jnp.float32)                      # (S, 2I)
    g = gu[:, :inter]
    u = gu[:, inter:]
    # SiLU with the divide on the EUP (approx reciprocal), not the VALU.
    act = (g * pl.reciprocal(1.0 + jnp.exp(-g), approx=True) * u).astype(jnp.bfloat16)
    d = jnp.dot(act, wd_ref[...], preferred_element_type=jnp.float32)     # (S, H)

    out_ref[...] = (d + h1).astype(out_ref.dtype)                         # residual 2


@jax.jit
def llama_encoder_layer(x, params):
    """x: (B, S, H) f32. params: fused / 2-D bf16 weights + f32 norm weights."""
    B, S, H = x.shape
    I = params["wd"].shape[0]
    kernel = functools.partial(encoder_layer_kernel, num_heads=NUM_HEADS)

    def w_spec(shape):
        return pl.BlockSpec(shape, lambda b: (0, 0))   # resident, DMA'd once

    out = pl.pallas_call(
        kernel,
        out_shape=jax.ShapeDtypeStruct((B * S, H), x.dtype),
        grid=(B,),                                     # one whole sequence per step
        in_specs=[
            pl.BlockSpec((S, H), lambda b: (b, 0)),    # x rows of sequence b
            w_spec((1, H)),                            # input norm weight
            w_spec((1, H)),                            # post-attn norm weight
            w_spec((H, 3 * H)),                        # fused Wq|Wk|Wv
            w_spec((H, H)),                            # Wo
            w_spec((H, 2 * I)),                        # fused Wgate|Wup
            w_spec((I, H)),                            # Wdown
        ],
        out_specs=pl.BlockSpec((S, H), lambda b: (b, 0)),
        compiler_params=pltpu.CompilerParams(
            dimension_semantics=("parallel",)),        # both TCs on v7x
    )(x.reshape(B * S, H),
      params["in_w"], params["post_w"],
      params["wqkv"], params["wo"], params["wgu"], params["wd"])
    return out.reshape(B, S, H)


def prepare_params(raw):
    """One-time weight transforms (done once per checkpoint, not per call)."""
    scale = 1.0 / math.sqrt(HEAD_DIM)
    wq_scaled = (raw["wq"].astype(jnp.float32) * scale).astype(jnp.bfloat16)
    wqkv = jnp.concatenate([wq_scaled, raw["wk"], raw["wv"]], axis=1)     # (H, 3H)
    wgu = jnp.concatenate([raw["wg"], raw["wu"]], axis=1)                 # (H, 2I)
    return {
        "in_w": raw["in_w"], "post_w": raw["post_w"],
        "wqkv": wqkv, "wo": raw["wo"], "wgu": wgu, "wd": raw["wd"],
    }


def reference_layer(x, w):
    """Pure-JAX f32 reference mirroring the PyTorch LlamaEncoderLayer forward."""
    B, S, H = x.shape

    def rmsnorm(y, wt):
        yf = y.astype(jnp.float32)
        var = jnp.mean(yf * yf, axis=-1, keepdims=True)
        return yf * jax.lax.rsqrt(var + EPS) * wt

    residual = x
    h = rmsnorm(x, w["in_w"])
    q = (h @ w["wq"]).reshape(B, S, NUM_HEADS, HEAD_DIM)
    k = (h @ w["wk"]).reshape(B, S, NUM_HEADS, HEAD_DIM)
    v = (h @ w["wv"]).reshape(B, S, NUM_HEADS, HEAD_DIM)
    aw = jnp.einsum("bqhd,bkhd->bhqk", q, k) / math.sqrt(HEAD_DIM)
    aw = jax.nn.softmax(aw, axis=-1)
    o = jnp.einsum("bhqk,bkhd->bqhd", aw, v).reshape(B, S, H)
    o = o @ w["wo"]
    h1 = o + residual
    h2 = rmsnorm(h1, w["post_w"])
    g = h2 @ w["wg"]
    u = h2 @ w["wu"]
    return (jax.nn.silu(g) * u) @ w["wd"] + h1


if __name__ == "__main__":
    key = jax.random.PRNGKey(0)
    ks = jax.random.split(key, 10)
    B, S = 2, 16

    def make_w(k, shape):
        # "checkpoint" weights stored in bf16 (MXU-friendly operands)
        return (0.02 * jax.random.normal(k, shape, jnp.float32)).astype(jnp.bfloat16)

    wq = make_w(ks[0], (HIDDEN, HIDDEN))
    wk = make_w(ks[1], (HIDDEN, HIDDEN))
    wv = make_w(ks[2], (HIDDEN, HIDDEN))
    wo = make_w(ks[3], (HIDDEN, HIDDEN))
    wg = make_w(ks[4], (HIDDEN, INTERMEDIATE))
    wu = make_w(ks[5], (HIDDEN, INTERMEDIATE))
    wd = make_w(ks[6], (INTERMEDIATE, HIDDEN))
    in_w = jax.random.uniform(ks[7], (1, HIDDEN), jnp.float32, 0.5, 1.5)
    post_w = jax.random.uniform(ks[8], (1, HIDDEN), jnp.float32, 0.5, 1.5)
    x = jax.random.normal(ks[9], (B, S, HIDDEN), jnp.float32)

    kernel_params = prepare_params({
        "in_w": in_w, "post_w": post_w,
        "wq": wq, "wk": wk, "wv": wv, "wo": wo,
        "wg": wg, "wu": wu, "wd": wd,
    })

    out = jax.block_until_ready(llama_encoder_layer(x, kernel_params))

    # Reference uses the same (bf16-stored) weights upcast to f32, in the
    # original 2-D layout, so the comparison isolates kernel numerics.
    ref_params = {
        "in_w": in_w, "post_w": post_w,
        "wq": wq.astype(jnp.float32), "wk": wk.astype(jnp.float32),
        "wv": wv.astype(jnp.float32), "wo": wo.astype(jnp.float32),
        "wg": wg.astype(jnp.float32), "wu": wu.astype(jnp.float32),
        "wd": wd.astype(jnp.float32),
    }
    ref = reference_layer(x, ref_params)

    assert out.shape == (B, S, HIDDEN)
    max_err = float(jnp.max(jnp.abs(out - ref)))
    assert jnp.allclose(out, ref, atol=5e-3, rtol=5e-3), f"max abs err = {max_err}"

    print("KERNEL_OK")
</pallas_src>

<mosaic_0001>
module attributes {stable_mosaic.version = 11 : i64} {
  func.func @encoder_layer_kernel(%arg0: i32, %arg1: memref<16x128xf32, #tpu.memory_space<vmem>>, %arg2: memref<1x128xf32, #tpu.memory_space<vmem>>, %arg3: memref<1x128xf32, #tpu.memory_space<vmem>>, %arg4: memref<128x384xbf16, #tpu.memory_space<vmem>>, %arg5: memref<128x128xbf16, #tpu.memory_space<vmem>>, %arg6: memref<128x512xbf16, #tpu.memory_space<vmem>>, %arg7: memref<256x128xbf16, #tpu.memory_space<vmem>>, %arg8: memref<16x128xf32, #tpu.memory_space<vmem>>) attributes {dimension_semantics = [#tpu.dimension_semantics<parallel>], iteration_bounds = array<i64: 2>, scalar_prefetch = 0 : i64, scratch_operands = 0 : i64, tpu.core_type = #tpu.core_type<tc>, window_params = [{transform_indices = @transform_0, window_bounds = array<i64: 16, 128>}, {pipeline_mode = #tpu.pipeline_mode<synchronous>, transform_indices = @transform_1, window_bounds = array<i64: 1, 128>}, {pipeline_mode = #tpu.pipeline_mode<synchronous>, transform_indices = @transform_2, window_bounds = array<i64: 1, 128>}, {pipeline_mode = #tpu.pipeline_mode<synchronous>, transform_indices = @transform_3, window_bounds = array<i64: 128, 384>}, {pipeline_mode = #tpu.pipeline_mode<synchronous>, transform_indices = @transform_4, window_bounds = array<i64: 128, 128>}, {pipeline_mode = #tpu.pipeline_mode<synchronous>, transform_indices = @transform_5, window_bounds = array<i64: 128, 512>}, {pipeline_mode = #tpu.pipeline_mode<synchronous>, transform_indices = @transform_6, window_bounds = array<i64: 256, 128>}, {transform_indices = @transform_7, window_bounds = array<i64: 16, 128>}]} {
    %c0 = arith.constant 0 : index
    %c0_0 = arith.constant 0 : index
    %0 = vector.load %arg1[%c0, %c0_0] : memref<16x128xf32, #tpu.memory_space<vmem>>, vector<16x128xf32>
    %c0_1 = arith.constant 0 : index
    %c0_2 = arith.constant 0 : index
    %1 = vector.load %arg2[%c0_1, %c0_2] : memref<1x128xf32, #tpu.memory_space<vmem>>, vector<1x128xf32>
    %2 = arith.mulf %0, %0 : vector<16x128xf32>
    %cst = arith.constant dense<0.000000e+00> : vector<16xf32>
    %3 = vector.multi_reduction <add>, %2, %cst [1] : vector<16x128xf32> to vector<16xf32>
    %4 = vector.shape_cast %3 : vector<16xf32> to vector<16x1xf32>
    %cst_3 = arith.constant 1.280000e+02 : f32
    %5 = vector.broadcast %cst_3 : f32 to vector<16x1xf32>
    %6 = arith.divf %4, %5 : vector<16x1xf32>
    %cst_4 = arith.constant 9.99999997E-7 : f32
    %7 = vector.broadcast %cst_4 : f32 to vector<16x1xf32>
    %8 = arith.addf %6, %7 : vector<16x1xf32>
    %9 = math.rsqrt %8 : vector<16x1xf32>
    %10 = vector.broadcast %9 : vector<16x1xf32> to vector<16x128xf32>
    %11 = arith.mulf %0, %10 : vector<16x128xf32>
    %12 = vector.broadcast %1 : vector<1x128xf32> to vector<16x128xf32>
    %13 = arith.mulf %11, %12 : vector<16x128xf32>
    %14 = arith.truncf %13 : vector<16x128xf32> to vector<16x128xbf16>
    %c0_5 = arith.constant 0 : index
    %c0_6 = arith.constant 0 : index
    %15 = vector.load %arg4[%c0_5, %c0_6] : memref<128x384xbf16, #tpu.memory_space<vmem>>, vector<128x384xbf16>
    %cst_7 = arith.constant dense<0.000000e+00> : vector<16x384xf32>
    %16 = tpu.matmul %14, %15, %cst_7 {dimension_numbers = #tpu.dot_dimension_numbers<[1], [0], [0], [1], [0, 0, 1, 1], [], []>} : vector<16x128xbf16>, vector<128x384xbf16>, vector<16x384xf32> -> vector<16x384xf32>
    %17 = vector.extract_strided_slice %16 {offsets = [0, 0], sizes = [16, 128], strides = [1, 1]} : vector<16x384xf32> to vector<16x128xf32>
    %18 = arith.truncf %17 : vector<16x128xf32> to vector<16x128xbf16>
    %19 = vector.extract_strided_slice %16 {offsets = [0, 128], sizes = [16, 128], strides = [1, 1]} : vector<16x384xf32> to vector<16x128xf32>
    %20 = arith.truncf %19 : vector<16x128xf32> to vector<16x128xbf16>
    %21 = vector.extract_strided_slice %16 {offsets = [0, 256], sizes = [16, 128], strides = [1, 1]} : vector<16x384xf32> to vector<16x128xf32>
    %22 = arith.truncf %21 : vector<16x128xf32> to vector<16x128xbf16>
    %23 = vector.extract_strided_slice %18 {offsets = [0, 0], sizes = [16, 32], strides = [1, 1]} : vector<16x128xbf16> to vector<16x32xbf16>
    %24 = vector.extract_strided_slice %18 {offsets = [0, 32], sizes = [16, 32], strides = [1, 1]} : vector<16x128xbf16> to vector<16x32xbf16>
    %25 = vector.extract_strided_slice %18 {offsets = [0, 64], sizes = [16, 32], strides = [1, 1]} : vector<16x128xbf16> to vector<16x32xbf16>
    %26 = vector.extract_strided_slice %18 {offsets = [0, 96], sizes = [16, 32], strides = [1, 1]} : vector<16x128xbf16> to vector<16x32xbf16>
    %27 = vector.shape_cast %23 : vector<16x32xbf16> to vector<1x16x32xbf16>
    %28 = vector.shape_cast %24 : vector<16x32xbf16> to vector<1x16x32xbf16>
    %29 = vector.shape_cast %25 : vector<16x32xbf16> to vector<1x16x32xbf16>
    %30 = vector.shape_cast %26 : vector<16x32xbf16> to vector<1x16x32xbf16>
    %31 = tpu.concatenate %27, %28, %29, %30 in 0 : vector<1x16x32xbf16>, vector<1x16x32xbf16>, vector<1x16x32xbf16>, vector<1x16x32xbf16> -> vector<4x16x32xbf16>
    %32 = vector.extract_strided_slice %20 {offsets = [0, 0], sizes = [16, 32], strides = [1, 1]} : vector<16x128xbf16> to vector<16x32xbf16>
    %33 = vector.extract_strided_slice %20 {offsets = [0, 32], sizes = [16, 32], strides = [1, 1]} : vector<16x128xbf16> to vector<16x32xbf16>
    %34 = vector.extract_strided_slice %20 {offsets = [0, 64], sizes = [16, 32], strides = [1, 1]} : vector<16x128xbf16> to vector<16x32xbf16>
    %35 = vector.extract_strided_slice %20 {offsets = [0, 96], sizes = [16, 32], strides = [1, 1]} : vector<16x128xbf16> to vector<16x32xbf16>
    %36 = vector.shape_cast %32 : vector<16x32xbf16> to vector<1x16x32xbf16>
    %37 = vector.shape_cast %33 : vector<16x32xbf16> to vector<1x16x32xbf16>
    %38 = vector.shape_cast %34 : vector<16x32xbf16> to vector<1x16x32xbf16>
    %39 = vector.shape_cast %35 : vector<16x32xbf16> to vector<1x16x32xbf16>
    %40 = tpu.concatenate %36, %37, %38, %39 in 0 : vector<1x16x32xbf16>, vector<1x16x32xbf16>, vector<1x16x32xbf16>, vector<1x16x32xbf16> -> vector<4x16x32xbf16>
    %41 = vector.extract_strided_slice %22 {offsets = [0, 0], sizes = [16, 32], strides = [1, 1]} : vector<16x128xbf16> to vector<16x32xbf16>
    %42 = vector.extract_strided_slice %22 {offsets = [0, 32], sizes = [16, 32], strides = [1, 1]} : vector<16x128xbf16> to vector<16x32xbf16>
    %43 = vector.extract_strided_slice %22 {offsets = [0, 64], sizes = [16, 32], strides = [1, 1]} : vector<16x128xbf16> to vector<16x32xbf16>
    %44 = vector.extract_strided_slice %22 {offsets = [0, 96], sizes = [16, 32], strides = [1, 1]} : vector<16x128xbf16> to vector<16x32xbf16>
    %45 = vector.shape_cast %41 : vector<16x32xbf16> to vector<1x16x32xbf16>
    %46 = vector.shape_cast %42 : vector<16x32xbf16> to vector<1x16x32xbf16>
    %47 = vector.shape_cast %43 : vector<16x32xbf16> to vector<1x16x32xbf16>
    %48 = vector.shape_cast %44 : vector<16x32xbf16> to vector<1x16x32xbf16>
    %49 = tpu.concatenate %45, %46, %47, %48 in 0 : vector<1x16x32xbf16>, vector<1x16x32xbf16>, vector<1x16x32xbf16>, vector<1x16x32xbf16> -> vector<4x16x32xbf16>
    "tpu.trace_start"() <{level = 10 : i32, message = "hqd,hkd->hqk"}> : () -> ()
    %cst_8 = arith.constant dense<0.000000e+00> : vector<4x16x16xf32>
    %50 = tpu.matmul %31, %40, %cst_8 {dimension_numbers = #tpu.dot_dimension_numbers<[2], [2], [1], [1], [0, 0, 0, 1, 1, 1], [0], [0]>} : vector<4x16x32xbf16>, vector<4x16x32xbf16>, vector<4x16x16xf32> -> vector<4x16x16xf32>
    "tpu.trace_stop"() : () -> ()
    %cst_9 = arith.constant dense<0xFF800000> : vector<4x16xf32>
    %51 = vector.multi_reduction <maximumf>, %50, %cst_9 [2] : vector<4x16x16xf32> to vector<4x16xf32>
    %52 = vector.shape_cast %51 : vector<4x16xf32> to vector<4x16x1xf32>
    %53 = vector.broadcast %52 : vector<4x16x1xf32> to vector<4x16x16xf32>
    %54 = arith.subf %50, %53 : vector<4x16x16xf32>
    %55 = math.exp %54 : vector<4x16x16xf32>
    %cst_10 = arith.constant dense<0.000000e+00> : vector<4x16xf32>
    %56 = vector.multi_reduction <add>, %55, %cst_10 [2] : vector<4x16x16xf32> to vector<4x16xf32>
    %57 = vector.shape_cast %56 : vector<4x16xf32> to vector<4x16x1xf32>
    %58 = tpu.reciprocal %57 {approx = true} : vector<4x16x1xf32> -> vector<4x16x1xf32>
    %59 = vector.broadcast %58 : vector<4x16x1xf32> to vector<4x16x16xf32>
    %60 = arith.mulf %55, %59 : vector<4x16x16xf32>
    %61 = arith.truncf %60 : vector<4x16x16xf32> to vector<4x16x16xbf16>
    "tpu.trace_start"() <{level = 10 : i32, message = "hqk,hkd->hqd"}> : () -> ()
    %cst_11 = arith.constant dense<0.000000e+00> : vector<4x16x32xf32>
    %62 = tpu.matmul %61, %49, %cst_11 {dimension_numbers = #tpu.dot_dimension_numbers<[2], [1], [1], [2], [0, 0, 0, 1, 1, 2], [0], [0]>} : vector<4x16x16xbf16>, vector<4x16x32xbf16>, vector<4x16x32xf32> -> vector<4x16x32xf32>
    "tpu.trace_stop"() : () -> ()
    %63 = vector.extract_strided_slice %62 {offsets = [0, 0, 0], sizes = [1, 16, 32], strides = [1, 1, 1]} : vector<4x16x32xf32> to vector<1x16x32xf32>
    %64 = vector.shape_cast %63 : vector<1x16x32xf32> to vector<16x32xf32>
    %65 = vector.extract_strided_slice %62 {offsets = [1, 0, 0], sizes = [1, 16, 32], strides = [1, 1, 1]} : vector<4x16x32xf32> to vector<1x16x32xf32>
    %66 = vector.shape_cast %65 : vector<1x16x32xf32> to vector<16x32xf32>
    %67 = vector.extract_strided_slice %62 {offsets = [2, 0, 0], sizes = [1, 16, 32], strides = [1, 1, 1]} : vector<4x16x32xf32> to vector<1x16x32xf32>
    %68 = vector.shape_cast %67 : vector<1x16x32xf32> to vector<16x32xf32>
    %69 = vector.extract_strided_slice %62 {offsets = [3, 0, 0], sizes = [1, 16, 32], strides = [1, 1, 1]} : vector<4x16x32xf32> to vector<1x16x32xf32>
    %70 = vector.shape_cast %69 : vector<1x16x32xf32> to vector<16x32xf32>
    %71 = tpu.concatenate %64, %66, %68, %70 in 1 : vector<16x32xf32>, vector<16x32xf32>, vector<16x32xf32>, vector<16x32xf32> -> vector<16x128xf32>
    %72 = arith.truncf %71 : vector<16x128xf32> to vector<16x128xbf16>
    %c0_12 = arith.constant 0 : index
    %c0_13 = arith.constant 0 : index
    %73 = vector.load %arg5[%c0_12, %c0_13] : memref<128x128xbf16, #tpu.memory_space<vmem>>, vector<128x128xbf16>
    %cst_14 = arith.constant dense<0.000000e+00> : vector<16x128xf32>
    %74 = tpu.matmul %72, %73, %cst_14 {dimension_numbers = #tpu.dot_dimension_numbers<[1], [0], [0], [1], [0, 0, 1, 1], [], []>} : vector<16x128xbf16>, vector<128x128xbf16>, vector<16x128xf32> -> vector<16x128xf32>
    %75 = arith.addf %74, %0 : vector<16x128xf32>
    %c0_15 = arith.constant 0 : index
    %c0_16 = arith.constant 0 : index
    %76 = vector.load %arg3[%c0_15, %c0_16] : memref<1x128xf32, #tpu.memory_space<vmem>>, vector<1x128xf32>
    %77 = arith.mulf %75, %75 : vector<16x128xf32>
    %cst_17 = arith.constant dense<0.000000e+00> : vector<16xf32>
    %78 = vector.multi_reduction <add>, %77, %cst_17 [1] : vector<16x128xf32> to vector<16xf32>
    %79 = vector.shape_cast %78 : vector<16xf32> to vector<16x1xf32>
    %cst_18 = arith.constant 1.280000e+02 : f32
    %80 = vector.broadcast %cst_18 : f32 to vector<16x1xf32>
    %81 = arith.divf %79, %80 : vector<16x1xf32>
    %cst_19 = arith.constant 9.99999997E-7 : f32
    %82 = vector.broadcast %cst_19 : f32 to vector<16x1xf32>
    %83 = arith.addf %81, %82 : vector<16x1xf32>
    %84 = math.rsqrt %83 : vector<16x1xf32>
    %85 = vector.broadcast %84 : vector<16x1xf32> to vector<16x128xf32>
    %86 = arith.mulf %75, %85 : vector<16x128xf32>
    %87 = vector.broadcast %76 : vector<1x128xf32> to vector<16x128xf32>
    %88 = arith.mulf %86, %87 : vector<16x128xf32>
    %89 = arith.truncf %88 : vector<16x128xf32> to vector<16x128xbf16>
    %c0_20 = arith.constant 0 : index
    %c0_21 = arith.constant 0 : index
    %90 = vector.load %arg6[%c0_20, %c0_21] : memref<128x512xbf16, #tpu.memory_space<vmem>>, vector<128x512xbf16>
    %cst_22 = arith.constant dense<0.000000e+00> : vector<16x512xf32>
    %91 = tpu.matmul %89, %90, %cst_22 {dimension_numbers = #tpu.dot_dimension_numbers<[1], [0], [0], [1], [0, 0, 1, 1], [], []>} : vector<16x128xbf16>, vector<128x512xbf16>, vector<16x512xf32> -> vector<16x512xf32>
    %92 = vector.extract_strided_slice %91 {offsets = [0, 0], sizes = [16, 256], strides = [1, 1]} : vector<16x512xf32> to vector<16x256xf32>
    %93 = vector.extract_strided_slice %91 {offsets = [0, 256], sizes = [16, 256], strides = [1, 1]} : vector<16x512xf32> to vector<16x256xf32>
    %cst_23 = arith.constant 0.000000e+00 : f32
    %94 = vector.broadcast %cst_23 : f32 to vector<16x256xf32>
    %95 = arith.subf %94, %92 : vector<16x256xf32>
    %96 = math.exp %95 : vector<16x256xf32>
    %cst_24 = arith.constant 1.000000e+00 : f32
    %97 = vector.broadcast %cst_24 : f32 to vector<16x256xf32>
    %98 = arith.addf %97, %96 : vector<16x256xf32>
    %99 = tpu.reciprocal %98 {approx = true} : vector<16x256xf32> -> vector<16x256xf32>
    %100 = arith.mulf %92, %99 : vector<16x256xf32>
    %101 = arith.mulf %100, %93 : vector<16x256xf32>
    %102 = arith.truncf %101 : vector<16x256xf32> to vector<16x256xbf16>
    %c0_25 = arith.constant 0 : index
    %c0_26 = arith.constant 0 : index
    %103 = vector.load %arg7[%c0_25, %c0_26] : memref<256x128xbf16, #tpu.memory_space<vmem>>, vector<256x128xbf16>
    %cst_27 = arith.constant dense<0.000000e+00> : vector<16x128xf32>
    %104 = tpu.matmul %102, %103, %cst_27 {dimension_numbers = #tpu.dot_dimension_numbers<[1], [0], [0], [1], [0, 0, 1, 1], [], []>} : vector<16x256xbf16>, vector<256x128xbf16>, vector<16x128xf32> -> vector<16x128xf32>
    %105 = arith.addf %104, %75 : vector<16x128xf32>
    %c0_28 = arith.constant 0 : index
    %c0_29 = arith.constant 0 : index
    %106 = vector.load %arg8[%c0_28, %c0_29] : memref<16x128xf32, #tpu.memory_space<vmem>>, vector<16x128xf32>
    tpu.vector_store %arg8[%c0_28, %c0_29], %105 {strides = array<i32>} : memref<16x128xf32, #tpu.memory_space<vmem>>, vector<16x128xf32>,
    return
  }
  func.func @transform_0(%arg0: i32) -> (i32, i32) {
    %c0_i32 = arith.constant 0 : i32
    %c0_i32_0 = arith.constant 0 : i32
    return %arg0, %c0_i32 : i32, i32
  }
  func.func @transform_1(%arg0: i32) -> (i32, i32) {
    %c0_i32 = arith.constant 0 : i32
    %c0_i32_0 = arith.constant 0 : i32
    %c0_i32_1 = arith.constant 0 : i32
    return %c0_i32, %c0_i32_0 : i32, i32
  }
  func.func @transform_2(%arg0: i32) -> (i32, i32) {
    %c0_i32 = arith.constant 0 : i32
    %c0_i32_0 = arith.constant 0 : i32
    %c0_i32_1 = arith.constant 0 : i32
    return %c0_i32, %c0_i32_0 : i32, i32
  }
  func.func @transform_3(%arg0: i32) -> (i32, i32) {
    %c0_i32 = arith.constant 0 : i32
    %c0_i32_0 = arith.constant 0 : i32
    %c0_i32_1 = arith.constant 0 : i32
    return %c0_i32, %c0_i32_0 : i32, i32
  }
  func.func @transform_4(%arg0: i32) -> (i32, i32) {
    %c0_i32 = arith.constant 0 : i32
    %c0_i32_0 = arith.constant 0 : i32
    %c0_i32_1 = arith.constant 0 : i32
    return %c0_i32, %c0_i32_0 : i32, i32
  }
  func.func @transform_5(%arg0: i32) -> (i32, i32) {
    %c0_i32 = arith.constant 0 : i32
    %c0_i32_0 = arith.constant 0 : i32
    %c0_i32_1 = arith.constant 0 : i32
    return %c0_i32, %c0_i32_0 : i32, i32
  }
  func.func @transform_6(%arg0: i32) -> (i32, i32) {
    %c0_i32 = arith.constant 0 : i32
    %c0_i32_0 = arith.constant 0 : i32
    %c0_i32_1 = arith.constant 0 : i32
    return %c0_i32, %c0_i32_0 : i32, i32
  }
  func.func @transform_7(%arg0: i32) -> (i32, i32) {
    %c0_i32 = arith.constant 0 : i32
    %c0_i32_0 = arith.constant 0 : i32
    return %arg0, %c0_i32 : i32, i32
  }
}

</mosaic_0001>

<bundles_post_ra>
// kernel: llama_encoder_layer.1
= control target key start
LH: loop header
LB: loop body
LE: loop exit
PB: predicated region body
PF: predicated region fallthrough
CT: control target
= control target key end

     0   :  { %s3107_s0 = inlined_call_operand.hbm [shape: f32[32,128], index: 0, kind: input, shape index: {}]   ;;  %s3108_s1 = inlined_call_operand.vmem [shape: f32[1,128], index: 1, kind: input, shape index: {}]   ;;  %s3109_s2 = inlined_call_operand.vmem [shape: f32[1,128], index: 2, kind: input, shape index: {}]   ;;  %s3110_s3 = inlined_call_operand.hbm [shape: bf16[128,384], index: 3, kind: input, shape index: {}]   ;;  %s3111_s4 = inlined_call_operand.hbm [shape: bf16[128,128], index: 4, kind: input, shape index: {}]   ;;  %s3112_s5 = inlined_call_operand.hbm [shape: bf16[128,512], index: 5, kind: input, shape index: {}]   ;;  %s3113_s6 = inlined_call_operand.hbm [shape: bf16[256,128], index: 6, kind: input, shape index: {}]   ;;  %s3114_s7 = inlined_call_operand.hbm [shape: f32[32,128], index: 7, kind: output, shape index: {}]  }
   0x1   :  { %3118 = sst [smem:[#allocation16_spill]] %s3110_s3 }
   0x2   :  { %12 = vsyncpa [#allocation3], 0 }
   0x3   :  { %14 = vsyncpa [#allocation3 + $0x1], 0 }
   0x4   :  { %15 = vsyncpa [#allocation6], 0 }
   0x5   :  { %16 = vsyncpa [#allocation9], 0 }
   0x6   :  { %17 = vsyncpa [#allocation4], 0 }
   0x7   :  { %19 = vsyncpa [#allocation4 + $0x1], 0  ;;  %s2696_s24 = smov 0   ;;  %s2698_s25 = smov 0  }
   0x8   :  { %s2700_s26 = smov 0   ;;  %s2702_s27 = smov 0  }
   0x9 LB: > { %s2717_s28 = sadd.s32 4294967295, %s2632_s27   ;;  %s1880_s29 = sadd.s32 4294967294, %s2632_s27   ;;  %s2632_s27 = sphi %s2702_s27, %s3139_s27   ;;  %s2628_s26 = sphi %s2700_s26, %s3138_s26   ;;  %s2624_s25 = sphi %s2698_s25, %s3137_s25   ;;  %s2620_s24 = sphi %s2696_s24, %s3136_s24  }
   0xa   : > { %p45_p0 = scmp.ne.s32.totalorder %s2624_s25, %s2620_s24  ;;  %p3115_p1 = scmp.eq.s32.totalorder %s2717_s28, 0 }
   0xb   : > { %p201_p3 = scmp.eq.s32.totalorder %s1880_s29, 1  ;;  %p1881_p5 = scmp.ge.s32.totalorder %s2632_s27, 1 }
   0xc   : > { %p2726_p4 = por %p3115_p1, %p45_p0  ;;  %p208_p7 = scmp.lt.s32.totalorder %s2632_s27, 3 }
   0xd   : > { %p2731_p6 = por %p201_p3, %p45_p0  ;;  %s2634_s10 = smov [#allocation5]  }
   0xe   : > { %s3119_s30 = scalar_select %p2726_p4, 1, 0 }
   0xf   : > { %s3120_s8 = scalar_select %p2731_p6, 1, 0 }
  0x10   : > { %p2736_p8 = pnand %p1881_p5, %p208_p7  ;;  %s226_s11 = sshll.u32 %s2634_s10, 4  ;;  %s2740_s11 = int_to_ptr.vmem [resolvable:$true] %s226_s11 }
  0x11   : > { %s2635_s13 = smov [#allocation8]   ;;  %s3123_s3 = sld [smem:[#allocation16_spill]] }
  0x12   : > { %s3121_s9 = scalar_select %p2736_p8, 1, 0 }
  0x13   : > { %p2158_p9 = pneg %p2736_p8  ;;  %s252_s14 = sshll.u32 %s2635_s13, 4  ;;  %s2751_s14 = int_to_ptr.vmem [resolvable:$true] %s252_s14 }
  0x15   : > { %p2747_p11 = pnand %p2158_p9, %p3115_p1 }
  0x17   : > { %s2416_s17 = scalar_lea.hbm %s3123_s3, 3072  ;;  %p2761_p13 = pneg %p2747_p11 }
  0x18   : > { %p2417_p12 = scmp.ne.s32.totalorder %s3123_s3, %s2416_s17  ;;  %p2423_p5 = scmp.lt.u32.totalorder %s2416_s17, %s3123_s3 }
  0x1a   : > { %p2419_p0 = pnand %p2761_p13, %p2417_p12 }
  0x1c   : > { %p2420_p3 = pneg %p2419_p0 }
  0x1e   : > { %p2425_p7 = pnand %p2423_p5, %p2420_p3 }
  0x20   : > { %2428 = shalt.err (!%p2425_p7)
}
  0x21   : > { %s2429_s23 = scalar_lea.vmem %s2740_s11, 3072  ;;  %p2437_p2 = scmp.lt.s32.totalorder %s2740_s11, %s2740_s11 }
  0x22   : > { %p2430_p9 = scmp.ne.s32.totalorder %s2740_s11, %s2429_s23  ;;  %p2438_p6 = scmp.lt.s32.totalorder %s2429_s23, %s2429_s23 }
  0x24   : > { %p2432_p10 = pnand %p2430_p9, %p2761_p13  ;;  %p2439_p12 = por %p2438_p6, %p2437_p2 }
  0x26   : > { %p2433_p1 = pneg %p2432_p10 }
  0x28   : > { %p2440_p0 = pnand %p2439_p12, %p2433_p1 }
  0x2a   : > { %2443 = shalt.err (!%p2440_p0)
}
  0x2b   : > { %s2636_s29 = smov 192   ;;  %s2637_s10 = smov 12  }
  0x2c   : > { %2161 = dma.hbm_to_vmem [thread:$0]  (!%p2747_p11), %s3123_s3, 3072, %s2740_s11, [#allocation6], %s2636_s29, %s2636_s29, %s2637_s10  }
  0x2d   : > { %s2444_s18 = scalar_lea.hbm %s3112_s5, 4096 }
  0x2e   : > { %p2445_p2 = scmp.ne.s32.totalorder %s3112_s5, %s2444_s18  ;;  %p2451_p10 = scmp.lt.u32.totalorder %s2444_s18, %s3112_s5 }
  0x30   : > { %p2447_p1 = pnand %p2445_p2, %p2761_p13 }
  0x32   : > { %p2448_p6 = pneg %p2447_p1 }
  0x34   : > { %p2453_p3 = pnand %p2451_p10, %p2448_p6 }
  0x36   : > { %2456 = shalt.err (!%p2453_p3)
}
  0x37   : > { %s2457_s11 = scalar_lea.vmem %s2751_s14, 4096  ;;  %p2465_p12 = scmp.lt.s32.totalorder %s2751_s14, %s2751_s14 }
  0x38   : > { %p2458_p5 = scmp.ne.s32.totalorder %s2751_s14, %s2457_s11  ;;  %p2466_p0 = scmp.lt.s32.totalorder %s2457_s11, %s2457_s11 }
  0x3a   : > { %p2460_p7 = pnand %p2458_p5, %p2761_p13  ;;  %p2467_p2 = por %p2466_p0, %p2465_p12 }
  0x3c   : > { %p2461_p9 = pneg %p2460_p7 }
  0x3e   : > { %p2468_p1 = pnand %p2467_p2, %p2461_p9 }
  0x40   : > { %2471 = shalt.err (!%p2468_p1)
}
  0x41   : > { %s2638_s29 = smov 256   ;;  %s2639_s10 = smov 16  }
  0x42   : > { %2167 = dma.hbm_to_vmem [thread:$0]  (!%p2747_p11), %s3112_s5, 4096, %s2751_s14, [#allocation9], %s2638_s29, %s2638_s29, %s2639_s10  }
  0x43   : > { %s2640_s16 = smov [#allocation7]   ;;  %s2472_s21 = scalar_lea.hbm %s3111_s4, 1024 }
  0x44   : > { %s239_s17 = sshll.u32 %s2640_s16, 4  ;;  %p2473_p6 = scmp.ne.s32.totalorder %s3111_s4, %s2472_s21  ;;  %s240_s17 = int_to_ptr.vmem [resolvable:$true] %s239_s17 }
  0x45   : > { %p2479_p5 = scmp.lt.u32.totalorder %s2472_s21, %s3111_s4 }
  0x46   : > { %p2475_p10 = pnand %p2473_p6, %p2761_p13 }
  0x48   : > { %p2476_p3 = pneg %p2475_p10 }
  0x4a   : > { %p2481_p7 = pnand %p2479_p5, %p2476_p3 }
  0x4c   : > { %2484 = shalt.err (!%p2481_p7)
}
  0x4d   : > { %s2485_s14 = scalar_lea.vmem %s240_s17, 1024  ;;  %p2493_p2 = scmp.lt.s32.totalorder %s240_s17, %s240_s17 }
  0x4e   : > { %p2486_p9 = scmp.ne.s32.totalorder %s240_s17, %s2485_s14  ;;  %p2494_p1 = scmp.lt.s32.totalorder %s2485_s14, %s2485_s14 }
  0x50   : > { %p2488_p12 = pnand %p2486_p9, %p2761_p13  ;;  %p2495_p4 = por %p2494_p1, %p2493_p2 }
  0x52   : > { %p2489_p0 = pneg %p2488_p12 }
  0x54   : > { %p2496_p8 = pnand %p2495_p4, %p2489_p0 }
  0x56   : > { %2499 = shalt.err (!%p2496_p8)
}
  0x57   : > { %s2641_s29 = smov 64   ;;  %s2642_s10 = smov 4  }
  0x58   : > { %2164 = dma.hbm_to_vmem [thread:$0]  (!%p2747_p11), %s3111_s4, 1024, %s240_s17, [#allocation6], %s2641_s29, %s2641_s29, %s2642_s10  }
  0x59   : > { %s2643_s15 = smov [#allocation10]   ;;  %s2500_s21 = scalar_lea.hbm %s3113_s6, 2048 }
  0x5a   : > { %s265_s16 = sshll.u32 %s2643_s15, 4  ;;  %p2501_p4 = scmp.ne.s32.totalorder %s3113_s6, %s2500_s21  ;;  %s266_s16 = int_to_ptr.vmem [resolvable:$true] %s265_s16 }
  0x5b   : > { %p2507_p10 = scmp.lt.u32.totalorder %s2500_s21, %s3113_s6 }
  0x5c   : > { %p2503_p8 = pnand %p2501_p4, %p2761_p13 }
  0x5e   : > { %p2504_p6 = pneg %p2503_p8 }
  0x60   : > { %p2509_p3 = pnand %p2507_p10, %p2504_p6 }
  0x62   : > { %2512 = shalt.err (!%p2509_p3)
}
  0x63   : > { %s2513_s17 = scalar_lea.vmem %s266_s16, 2048  ;;  %p2521_p12 = scmp.lt.s32.totalorder %s266_s16, %s266_s16 }
  0x64   : > { %p2514_p5 = scmp.ne.s32.totalorder %s266_s16, %s2513_s17  ;;  %p2522_p0 = scmp.lt.s32.totalorder %s2513_s17, %s2513_s17 }
  0x66   : > { %p2516_p7 = pnand %p2514_p5, %p2761_p13  ;;  %p2523_p2 = por %p2522_p0, %p2521_p12 }
  0x68   : > { %p2517_p9 = pneg %p2516_p7 }
  0x6a   : > { %p2524_p1 = pnand %p2523_p2, %p2517_p9 }
  0x6c   : > { %2527 = shalt.err (!%p2524_p1)
}
  0x6d   : > { %2170 = dma.hbm_to_vmem [thread:$0]  (!%p2747_p11), %s3113_s6, 2048, %s266_s16, [#allocation9], %s2641_s29, %s2641_s29, %s2642_s10  }
  0x6e   : > { %s2842_s20 = sadd.s32 1, %s2632_s27   ;;  %s32_s15 = sadd.s32 1, %s2628_s26 }
  0x6f   : > { %s29_s12 = ssub.s32 %s2632_s27, %s2842_s20  ;;  %p39_p13 = scmp.ne.s32.totalorder %s2628_s26, %s2624_s25 }
  0x70   : > { %p30_p4 = scmp.eq.s32.totalorder %s29_s12, 0  ;;  %p40_p8 = scmp.eq.s32.totalorder %s2632_s27, 0 }
  0x71   : > { %p3125_p6 = scmp.eq.s32.totalorder %s2717_s28, 1  ;;  %p2183_p3 = scmp.lt.s32.totalorder %s2632_s27, 2 }
  0x72   : > { %s2858_s19 = scalar_select %p30_p4, %s2628_s26, %s32_s15  }
  0x73   : > { %p2852_p10 = por %p3125_p6, %p39_p13  ;;  %p41_p5 = por %p40_p8, %p39_p13 }
  0x74   : > { %s279_s21 = sand.u32 1, %s2628_s26   ;;  %s1992_s29 = sshll.u32 %s2632_s27, 8 }
  0x75   : > { %s1887_s22 = sshll.u32 %s279_s21, 4  ;;  %s2865_s23 = scalar_lea.hbm %s3107_s0, %s1992_s29 }
  0x76   : > { %s283_s11 = scalar_lea.vmem [#allocation2], %s1887_s22  ;;  %p2869_p11 = pnand %p2183_p3, %p41_p5 }
  0x77   : > { %s290_s14 = sshll.u32 %s283_s11, 4  ;;  %s2873_s3 = scalar_lea.sflag [#allocation3], %s279_s21  ;;  %s2867_s14 = int_to_ptr.vmem [resolvable:$true] %s290_s14 }
  0x78   : > { %s2528_s13 = scalar_lea.hbm %s2865_s23, 256  ;;  %p2530_p9 = pneg %p2869_p11 }
  0x79   : > { %p2529_p7 = scmp.ne.s32.totalorder %s2865_s23, %s2528_s13  ;;  %s2533_s22 = scalar_lea.hbm %s3107_s0, 512 }
  0x7a   : > { %p2534_p2 = scmp.lt.u32.totalorder %s2865_s23, %s3107_s0  ;;  %p2535_p1 = scmp.lt.u32.totalorder %s2533_s22, %s2528_s13 }
  0x7b   : > { %p2531_p12 = pnand %p2530_p9, %p2529_p7  ;;  %p2537_p4 = scmp.lt.u32.totalorder %s2528_s13, %s2865_s23 }
  0x7c   : > { %p2536_p13 = por %p2535_p1, %p2534_p2 }
  0x7d   : > { %p2532_p0 = pneg %p2531_p12 }
  0x7e   : > { %p2538_p8 = por %p2537_p4, %p2536_p13 }
  0x80   : > { %p2539_p6 = pnand %p2538_p8, %p2532_p0 }
  0x82   : > { %2542 = shalt.err (!%p2539_p6)
}
  0x83   : > { %s2543_s21 = scalar_lea.vmem %s2867_s14, 256  ;;  %s2644_s16 = smov [#allocation2]  }
  0x84   : > { %p2544_p3 = scmp.ne.s32.totalorder %s2867_s14, %s2543_s21  ;;  %s2548_s11 = sshll.u32 %s2644_s16, 4  ;;  %s2549_s11 = int_to_ptr.vmem [resolvable:$false] %s2548_s11 }
  0x85   : > { %s2550_s15 = scalar_lea.vmem %s2549_s11, 512  ;;  %p2551_p12 = scmp.lt.s32.totalorder %s2867_s14, %s2549_s11 }
  0x86   : > { %p2546_p5 = pnand %p2544_p3, %p2530_p9  ;;  %p2552_p2 = scmp.lt.s32.totalorder %s2550_s15, %s2543_s21 }
  0x88   : > { %p2547_p7 = pneg %p2546_p5  ;;  %p2553_p1 = por %p2552_p2, %p2551_p12 }
  0x8a   : > { %p2554_p13 = pnand %p2553_p1, %p2547_p7 }
  0x8c   : > { %2557 = shalt.err (!%p2554_p13)
}
  0x8d   : > { %s2645_s13 = smov 128   ;;  %s2646_s12 = smov 8  }
  0x8e   : > { %2174 = dma.hbm_to_vmem [thread:$0]  (!%p2869_p11), %s2865_s23, 256, %s2867_s14, %s2873_s3, %s2645_s13, %s2645_s13, %s2646_s12  }
  0x8f   : > { %p3128_p9 = scmp.ne.s32.totalorder %s3121_s9, 0 }
  0x90   : > { %s2904_s22 = sand.u32 (!%p3128_p9), 1, %s2624_s25   ;;  %p3129_p0 = scmp.ne.s32.totalorder (!%p3128_p9), %s3119_s30, 0 }
  0x91   : > { %302 = sbr.rel (%p3128_p9) target bundleno = 2461 (0x99d), region = 48  ;;  %s1891_s29 = sshll.u32 (!%p3128_p9), %s2904_s22, 4 }
  0x92   : > { %s305_s10 = scalar_lea.sflag (!%p3128_p9), [#allocation3], %s2904_s22  ;;  %s308_s21 = scalar_lea.vmem (!%p3128_p9), [#allocation2], %s1891_s29 }
  0x98   : > { %2603 = dma.done.wait (%p3129_p0), %s305_s10, 256  }
  0x99   : > { %2605 = vsyncadd (%p3129_p0), %s305_s10, 4294967040  ;;  %p3130_p11 = scmp.eq.s32.totalorder %s2717_s28, 0 }
  0x9b   : > { %2607 = dma.done.wait (%p3130_p11), [#allocation6], 4096   ;;  %p3131_p4 = pmov %p3130_p11 }
  0x9d   : > { %2609 = vsyncadd (%p3131_p4), [#allocation6], 4294963200  ;;  %p3132_p8 = pmov %p3131_p4 }
  0x9e   : > { %p3133_p6 = pmov %p3131_p4 }
  0x9f   : > { %2611 = dma.done.wait (%p3132_p8), [#allocation9], 6144  }
  0xa0   : > { %2613 = vsyncadd (%p3133_p6), [#allocation9], 4294961152  ;;  %v2647_v0 = vmov 0.0   ;;  %v2923_v1 = vld [vmem:[%s308_s21] sm:$0xff]  ;;  %v2925_v2 = vld [vmem:[%s308_s21 + $0x8] sm:$0xff]  ;;  %v2648_v26 = vmov 0  }
  0xa1   : > { %2050 = vmatprep.subr.bf16.mxu1 %v2647_v0  ;;  %v361_v3 = vmul.f32 %v2923_v1, %v2923_v1  ;;  %v2256_v4 = vld [vmem:[#allocation5 + $0x4] ss:$12 sps:$4 sm:$0xff]   ;;  %v2258_v5 = vld [vmem:[#allocation5] ss:$12 sps:$4 sm:$0xff]   ;;  %v2259_v6 = vld [vmem:[#allocation5 + $0x8] ss:$12 sps:$4 sm:$0xff]   ;;  %v362_v7 = vmul.f32 %v2925_v2, %v2925_v2  ;;  %577 = vmatprep.mubr.bf16.mxu0 %v2648_v26 }
  0xa2   : > { %545 = vmatprep.subr.bf16.mxu0 %v2256_v4  ;;  %v2260_v8 = vld [vmem:[#allocation5 + $0x1c] ss:$12 sps:$4 sm:$0xff]   ;;  %2051 = vmatpush3.bf16.msra.mxu1 %v2259_v6  ;;  %v2262_v9 = vld [vmem:[#allocation5 + $0x18] ss:$12 sps:$4 sm:$0xff]   ;;  %v2263_v10 = vld [vmem:[#allocation5 + $0x20] ss:$12 sps:$4 sm:$0xff]  }
  0xa3   : > { %363 = vadd.xlane.f32.xlu0 %v361_v3  ;;  %546 = vmatpush1.bf16.msra.mxu0 %v2258_v5  ;;  %v2264_v11 = vld [vmem:[#allocation5 + $0x34] ss:$12 sps:$4 sm:$0xff]   ;;  %v2266_v12 = vld [vmem:[#allocation5 + $0x30] ss:$12 sps:$4 sm:$0xff]   ;;  %v2267_v13 = vld [vmem:[#allocation5 + $0x38] ss:$12 sps:$4 sm:$0xff]  }
  0xa4   : > { %547 = vmatprep.subr.bf16.mxu0 %v2260_v8  ;;  %2052 = vmatprep.subr.bf16.mxu1 %v2647_v0  ;;  %v2268_v14 = vld [vmem:[#allocation5 + $0x4c] ss:$12 sps:$4 sm:$0xff]   ;;  %v2270_v15 = vld [vmem:[#allocation5 + $0x48] ss:$12 sps:$4 sm:$0xff]   ;;  %v2271_v16 = vld [vmem:[#allocation5 + $0x50] ss:$12 sps:$4 sm:$0xff]  }
  0xa5   : > { %v2272_v17 = vld [vmem:[#allocation5 + $0x64] ss:$12 sps:$4 sm:$0xff]   ;;  %v2274_v18 = vld [vmem:[#allocation5 + $0x60] ss:$12 sps:$4 sm:$0xff]   ;;  %v2275_v19 = vld [vmem:[#allocation5 + $0x68] ss:$12 sps:$4 sm:$0xff]  }
  0xa6   : > { %2053 = vmatpush3.bf16.msra.mxu1 %v2263_v10  ;;  %v2276_v20 = vld [vmem:[#allocation5 + $0x7c] ss:$12 sps:$4 sm:$0xff]   ;;  %v2278_v21 = vld [vmem:[#allocation5 + $0x78] ss:$12 sps:$4 sm:$0xff]   ;;  %v2279_v22 = vld [vmem:[#allocation5 + $0x80] ss:$12 sps:$4 sm:$0xff]  }
  0xa7   : > { %365 = vadd.xlane.f32.xlu0 %v362_v7  ;;  %548 = vmatpush1.bf16.msra.mxu0 %v2262_v9  ;;  %v2280_v23 = vld [vmem:[#allocation5 + $0x94] ss:$12 sps:$4 sm:$0xff]   ;;  %v2282_v24 = vld [vmem:[#allocation5 + $0x90] ss:$12 sps:$4 sm:$0xff]   ;;  %v2283_v25 = vld [vmem:[#allocation5 + $0x98] ss:$12 sps:$4 sm:$0xff]  }
  0xa8   : > { %2054 = vmatprep.subr.bf16.mxu1 %v2647_v0  ;;  %549 = vmatprep.subr.bf16.mxu0 %v2264_v11  ;;  %vm2649_vm0 = vmmov 0   ;;  %v2284_v27 = vld [vmem:[#allocation5 + $0xac] ss:$12 sps:$4 sm:$0xff]   ;;  %v2286_v28 = vld [vmem:[#allocation5 + $0xa8] ss:$12 sps:$4 sm:$0xff]   ;;  %vm656_vm1 = vcmask 261120  }
  0xa9   : > { %2066 = vmatprep.mubr.msk.bf16.mxu1 %vm2649_vm0, %v2647_v0  ;;  %v2287_v29 = vld [vmem:[#allocation5 + $0xb0] ss:$12 sps:$4 sm:$0xff]   ;;  %v1897_v39 = vld [vmem:[%s3108_s1] ss:$0 sm:$0xff]  ;;  %s2650_s23 = smov 96   ;;  %s2651_s14 = smov 64  }
  0xaa   : > { %2055 = vmatpush3.bf16.msra.mxu1 %v2267_v13  ;;  %s2652_s17 = smov 32   ;;  %vm845_vm2 = vcmask 130048   ;;  %vm1140_vm3 = vcmask 523264   ;;  %vm1143_vm4 = vcmask 785408   ;;  %s354_s11 = scalar_lea.vmem [#allocation11], %s1891_s29 }
  0xab   : > { %550 = vmatpush1.bf16.msra.mxu0 %v2266_v12  ;;  %2056 = vmatprep.subr.bf16.mxu1 %v2647_v0  ;;  %s1769_s15 = sshll.u32 %s354_s11, 4  ;;  %s1993_s13 = sshll.u32 %s2717_s28, 8  ;;  %s3057_s15 = int_to_ptr.vmem [resolvable:$true] %s1769_s15 }
  0xac   : > { %551 = vmatprep.subr.bf16.mxu0 %v2268_v14  ;;  %s3062_s21 = scalar_lea.hbm %s3114_s7, %s1993_s13  ;;  %s1756_s29 = scalar_lea.sflag [#allocation4], %s2904_s22 }
  0xad   : > { %s2558_s28 = scalar_lea.vmem %s3057_s15, 256  ;;  %s2653_s30 = smov [#allocation11]  }
  0xae   : > { %2057 = vmatpush3.bf16.msra.mxu1 %v2271_v16  ;;  %p2559_p3 = scmp.ne.s32.totalorder %s3057_s15, %s2558_s28  ;;  %s2562_s9 = sshll.u32 %s2653_s30, 4  ;;  %s2563_s9 = int_to_ptr.vmem [resolvable:$false] %s2562_s9 }
  0xaf   : > { %552 = vmatpush1.bf16.msra.mxu0 %v2270_v15  ;;  %2058 = vmatprep.subr.bf16.mxu1 %v2647_v0  ;;  %p2565_p12 = scmp.lt.s32.totalorder %s3057_s15, %s2563_s9 }
  0xb0   : > { %553 = vmatprep.subr.bf16.mxu0 %v2272_v17  ;;  %p2560_p5 = pnand %p2559_p3, %p2852_p10 }
  0xb2   : > { %2059 = vmatpush3.bf16.msra.mxu1 %v2275_v19  ;;  %p2561_p7 = pneg %p2560_p5 }
  0xb3   : > { %554 = vmatpush1.bf16.msra.mxu0 %v2274_v18  ;;  %2060 = vmatprep.subr.bf16.mxu1 %v2647_v0 }
  0xb4   : > { %555 = vmatprep.subr.bf16.mxu0 %v2276_v20 }
  0xb6   : > { %2061 = vmatpush3.bf16.msra.mxu1 %v2279_v22 }
  0xb7   : > { %556 = vmatpush1.bf16.msra.mxu0 %v2278_v21  ;;  %2062 = vmatprep.subr.bf16.mxu1 %v2647_v0 }
  0xb8   : > { %557 = vmatprep.subr.bf16.mxu0 %v2280_v23 }
  0xba   : > { %2063 = vmatpush3.bf16.msra.mxu1 %v2283_v25 }
  0xbb   : > { %558 = vmatpush1.bf16.msra.mxu0 %v2282_v24  ;;  %2064 = vmatprep.subr.bf16.mxu1 %v2647_v0 }
  0xbc   : > { %559 = vmatprep.subr.bf16.mxu0 %v2284_v27 }
  0xbe   : > { %2065 = vmatpush3.bf16.msra.mxu1 %v2287_v29 }
  0xbf   : > { %560 = vmatpush1.bf16.msra.mxu0 %v2286_v28  ;;  %2076 = vmatprep.subr.bf16.mxu1 %v2647_v0 }
  0xc0   : > { %2070 = vmatprep.subr.bf16.mxu0 %v2647_v0 }
 0x130   : > { %v364_v30 = vpop.xlane.xlu0 %363 }
 0x131   : > { %v368_v31 = vmul.f32 0.0078125, %v364_v30 }
 0x133   : > { %v370_v32 = vadd.f32 1e-06, %v368_v31 }
 0x134   : > { %v366_v33 = vpop.xlane.xlu0 %365 }
 0x135   : > { %2360 = vrsqrt.f32 %v370_v32  ;;  %v369_v34 = vmul.f32 0.0078125, %v366_v33 }
 0x137   : > { %v371_v35 = vadd.f32 1e-06, %v369_v34 }
 0x139   : > { %2362 = vrsqrt.f32 %v371_v35 }
 0x13f   : > { %v2361_v36 = vpop.eup %2360 }
 0x140   : > { %v374_v37 = vmul.f32 %v2361_v36, %v2923_v1 }
 0x142   : > { %v382_v41 = vmul.f32 %v1897_v39, %v374_v37 }
 0x143   : > { %v2363_v38 = vpop.eup %2362 }
 0x144   : > { %v375_v40 = vmul.f32 %v2363_v38, %v2925_v2 }
 0x146   : > { %v383_v42 = vmul.f32 %v1897_v39, %v375_v40 }
 0x148   : > { %v384_v43 = vpack.c.bf16 %v383_v42, %v382_v41 }
 0x14a   : > { %578 = vmatmul.mubr.bf16.vlgmr.msra.gmra.mrb[0].mxu0 %v384_v43  ;;  %2067 = vmatmul.mubr.bf16.vlgmr.msra.gmra.mrb[0].mxu1 %v384_v43 }
 0x14b   : > { %2072 = vmatprep.mubr.msk.bf16.mxu0 %vm2649_vm0, %v2647_v0  ;;  %2078 = vmatprep.mubr.msk.bf16.mxu1 %vm2649_vm0, %v2647_v0 }
 0x21d   : > { %v579_v44 = vpop.f32.mrb[0].mxu0  ;;  %v622_v45 = vpop.f32.mrb[0].mxu1 }
 0x21e   : > { %v581_v46 = vpop.f32.mrb[1].mxu0  ;;  %v2068_v47 = vpop.f32.mrb[1].mxu1 }
 0x21f   : > { %v583_v48 = vpop.f32.mrb[2].mxu0  ;;  %v625_v49 = vpop.f32.mrb[2].mxu1 }
 0x220   : > { %v629_v50 = vpack.c.bf16 %v583_v48, %v579_v44  ;;  %v2952_v51 = vpack.c.bf16 %v625_v49, %v622_v45  ;;  %v585_v52 = vpop.f32.mrb[3].mxu0  ;;  %v2069_v53 = vpop.f32.mrb[3].mxu1 }
 0x221   : > { %v630_v54 = vpack.c.bf16 %v585_v52, %v581_v46 }
 0x222   : > { %633 = vrot.lane.b32.xlu0 %v629_v50, %s2650_s23 }
 0x223   : > { %640 = vrot.lane.b32.xlu1 %v630_v54, %s2650_s23  ;;  %v661_v55 = vsel %vm656_vm1, %v630_v54, 0 }
 0x224   : > { %2071 = vmatpush3.bf16.xpose.msra.mxu0 %v661_v55 }
 0x225   : > { %2082 = vmatprep.subr.bf16.mxu0 %v2647_v0 }
 0x227   : > { %642 = vrot.lane.b32.xlu1 %v630_v54, %s2651_s14 }
 0x22b   : > { %644 = vrot.lane.b32.xlu1 %v630_v54, %s2652_s17  ;;  %2073 = vmatmul.mubr.msk.bf16.vlgmr.msra.gmra.mrb[4].mxu0 %vm656_vm1, %v629_v50 }
 0x22c   : > { %2084 = vmatprep.mubr.msk.bf16.mxu0 %vm2649_vm0, %v2647_v0 }
 0x22f   : > { %635 = vrot.lane.b32.xlu1 %v629_v50, %s2651_s14 }
 0x233   : > { %637 = vrot.lane.b32.xlu1 %v629_v50, %s2652_s17 }
 0x294   : > { %v634_v60 = vpop.permute.xlu0 %633 }
 0x295   : > { %v641_v56 = vpop.permute.xlu1 %640 }
 0x296   : > { %v708_v57 = vsel %vm656_vm1, %v641_v56, 0 }
 0x297   : > { %2077 = vmatpush3.bf16.xpose.msra.mxu1 %v708_v57 }
 0x298   : > { %2088 = vmatprep.subr.bf16.mxu1 %v2647_v0 }
 0x299   : > { %v643_v58 = vpop.permute.xlu1 %642 }
 0x29a   : > { %v755_v59 = vsel %vm656_vm1, %v643_v58, 0 }
 0x29b   : > { %2083 = vmatpush3.bf16.xpose.msra.mxu0 %v755_v59 }
 0x29c   : > { %2094 = vmatprep.subr.bf16.mxu0 %v2647_v0 }
 0x29d   : > { %v645_v61 = vpop.permute.xlu1 %644 }
 0x29e   : > { %v802_v62 = vsel %vm656_vm1, %v645_v61, 0  ;;  %2079 = vmatmul.mubr.msk.bf16.vlgmr.msra.gmra.mrb[4].mxu1 %vm656_vm1, %v634_v60 }
 0x29f   : > { %2089 = vmatpush3.bf16.xpose.msra.mxu1 %v802_v62  ;;  %2090 = vmatprep.mubr.msk.bf16.mxu1 %vm2649_vm0, %v2647_v0 }
 0x2a0   : > { %2100 = vmatprep.subr.bf16.mxu1 %v2647_v0 }
 0x2a1   : > { %v636_v63 = vpop.permute.xlu1 %635 }
 0x2a2   : > { %2085 = vmatmul.mubr.msk.bf16.vlgmr.msra.gmra.mrb[8].mxu0 %vm656_vm1, %v636_v63 }
 0x2a3   : > { %2095 = vmatpush3.bf16.msra.mxu0 %v2952_v51  ;;  %2096 = vmatprep.mubr.msk.bf16.mxu0 %vm2649_vm0, %v2647_v0 }
 0x2a4   : > { %2106 = vmatprep.subr.bf16.mxu0 %v2647_v0 }
 0x2a5   : > { %v638_v3 = vpop.permute.xlu1 %637 }
 0x2a6   : > { %2091 = vmatmul.mubr.msk.bf16.vlgmr.msra.gmra.mrb[8].mxu1 %vm656_vm1, %v638_v3 }
 0x2a7   : > { %2102 = vmatprep.mubr.msk.bf16.mxu1 %vm2649_vm0, %v2647_v0 }
 0x2fe   : > { %v697_v4 = vpop.f32.mrb[4].mxu0 }
 0x2ff   : > { %v2074_v5 = vpop.f32.mrb[5].mxu0  ;;  %v846_v6 = vsel %vm845_vm2, %v697_v4, -inf }
 0x300   : > { %847 = vmax.xlane.f32.xlu1 %v846_v6  ;;  %v700_v7 = vpop.f32.mrb[6].mxu0 }
 0x301   : > { %v2075_v8 = vpop.f32.mrb[7].mxu0  ;;  %v849_v9 = vsel %vm845_vm2, %v700_v7, -inf }
 0x302   : > { %850 = vmax.xlane.f32.xlu0 %v849_v9 }
 0x371   : > { %v744_v10 = vpop.f32.mrb[4].mxu1 }
 0x372   : > { %v2080_v11 = vpop.f32.mrb[5].mxu1  ;;  %v852_v12 = vsel %vm845_vm2, %v744_v10, -inf }
 0x373   : > { %v747_v13 = vpop.f32.mrb[6].mxu1  ;;  %853 = vmax.xlane.f32.xlu1 %v852_v12 }
 0x374   : > { %v2081_v14 = vpop.f32.mrb[7].mxu1  ;;  %v855_v17 = vsel %vm845_vm2, %v747_v13, -inf }
 0x375   : > { %v791_v15 = vpop.f32.mrb[8].mxu0 }
 0x376   : > { %v2086_v16 = vpop.f32.mrb[9].mxu0  ;;  %v858_v18 = vsel %vm845_vm2, %v791_v15, -inf }
 0x377   : > { %856 = vmax.xlane.f32.xlu1 %v855_v17  ;;  %859 = vmax.xlane.f32.xlu0 %v858_v18  ;;  %v794_v19 = vpop.f32.mrb[10].mxu0 }
 0x378   : > { %v2087_v20 = vpop.f32.mrb[11].mxu0  ;;  %v861_v24 = vsel %vm845_vm2, %v794_v19, -inf }
 0x379   : > { %v838_v21 = vpop.f32.mrb[8].mxu1 }
 0x37a   : > { %v2092_v22 = vpop.f32.mrb[9].mxu1  ;;  %v864_v23 = vsel %vm845_vm2, %v838_v21, -inf }
 0x37b   : > { %v2989_v25 = vpop.f32.mrb[10].mxu1  ;;  %865 = vmax.xlane.f32.xlu0 %v864_v23  ;;  %862 = vmax.xlane.f32.xlu1 %v861_v24 }
 0x37c   : > { %v2093_v27 = vpop.f32.mrb[11].mxu1  ;;  %v867_v28 = vsel %vm845_vm2, %v2989_v25, -inf }
 0x37f   : > { %868 = vmax.xlane.f32.xlu1 %v867_v28 }
 0x38d   : > { %v848_v29 = vpop.xlane.xlu1 %847 }
 0x38e   : > { %v870_v30 = vsub.f32 %v697_v4, %v848_v29 }
 0x38f   : > { %v851_v31 = vpop.xlane.xlu0 %850 }
 0x390   : > { %v878_v32 = vmul.f32 1.442695, %v870_v30  ;;  %v871_v33 = vsub.f32 %v700_v7, %v851_v31 }
 0x392   : > { %2364 = vpow2.f32 %v878_v32  ;;  %v880_v34 = vmul.f32 1.442695, %v871_v33 }
 0x394   : > { %2366 = vpow2.f32 %v880_v34 }
 0x39c   : > { %v2365_v35 = vpop.eup %2364 }
 0x39d   : > { %v894_v36 = vsel %vm845_vm2, %v2365_v35, 0.0 }
 0x39e   : > { %v2367_v37 = vpop.eup %2366  ;;  %895 = vadd.xlane.f32.xlu0 %v894_v36 }
 0x39f   : > { %v897_v38 = vsel %vm845_vm2, %v2367_v37, 0.0 }
 0x3a0   : > { %898 = vadd.xlane.f32.xlu1 %v897_v38 }
 0x400   : > { %v854_v39 = vpop.xlane.xlu1 %853 }
 0x401   : > { %v872_v40 = vsub.f32 %v744_v10, %v854_v39 }
 0x403   : > { %v882_v41 = vmul.f32 1.442695, %v872_v40 }
 0x404   : > { %v857_v42 = vpop.xlane.xlu1 %856  ;;  %v860_v43 = vpop.xlane.xlu0 %859 }
 0x405   : > { %2368 = vpow2.f32 %v882_v41  ;;  %v873_v44 = vsub.f32 %v747_v13, %v857_v42  ;;  %v874_v45 = vsub.f32 %v791_v15, %v860_v43 }
 0x407   : > { %v884_v46 = vmul.f32 1.442695, %v873_v44  ;;  %v886_v47 = vmul.f32 1.442695, %v874_v45  ;;  %v2288_v45 = vld [vmem:[#allocation7] sm:$0xff]  }
 0x408   : > { %v866_v48 = vpop.xlane.xlu0 %865  ;;  %v863_v49 = vpop.xlane.xlu1 %862 }
 0x409   : > { %2370 = vpow2.f32 %v884_v46  ;;  %v876_v50 = vsub.f32 %v838_v21, %v866_v48  ;;  %v875_v52 = vsub.f32 %v794_v19, %v863_v49  ;;  %v2289_v48 = vld [vmem:[#allocation7 + $0x8] sm:$0xff]  }
 0x40a   : > { %2372 = vpow2.f32 %v886_v47 }
 0x40b   : > { %v890_v53 = vmul.f32 1.442695, %v876_v50  ;;  %v888_v54 = vmul.f32 1.442695, %v875_v52 }
 0x40c   : > { %v869_v4 = vpop.xlane.xlu1 %868 }
 0x40d   : > { %2374 = vpow2.f32 %v890_v53  ;;  %v877_v9 = vsub.f32 %v2989_v25, %v869_v4  ;;  %v2290_v53 = vld [vmem:[#allocation7 + $0x10] sm:$0xff]  }
 0x40e   : > { %2376 = vpow2.f32 %v888_v54 }
 0x40f   : > { %v2369_v55 = vpop.eup %2368  ;;  %v892_v13 = vmul.f32 1.442695, %v877_v9 }
 0x410   : > { %v900_v56 = vsel %vm845_vm2, %v2369_v55, 0.0 }
 0x411   : > { %901 = vadd.xlane.f32.xlu0 %v900_v56 }
 0x413   : > { %v2371_v57 = vpop.eup %2370 }
 0x414   : > { %v2373_v58 = vpop.eup %2372  ;;  %v903_v59 = vsel %vm845_vm2, %v2371_v57, 0.0 }
 0x415   : > { %v906_v60 = vsel %vm845_vm2, %v2373_v58, 0.0  ;;  %904 = vadd.xlane.f32.xlu1 %v903_v59  ;;  %v2292_v59 = vld [vmem:[#allocation7 + $0x20] sm:$0xff]  }
 0x416   : > { %907 = vadd.xlane.f32.xlu0 %v906_v60  ;;  %v2293_v60 = vld [vmem:[#allocation7 + $0x28] sm:$0xff]  }
 0x417   : > { %v2998_v61 = vpop.eup %2374 }
 0x418   : > { %v2377_v62 = vpop.eup %2376  ;;  %v912_v63 = vsel %vm845_vm2, %v2998_v61, 0.0 }
 0x419   : > { %v909_v3 = vsel %vm845_vm2, %v2377_v62, 0.0 }
 0x41a   : > { %913 = vadd.xlane.f32.xlu0 %v912_v63  ;;  %910 = vadd.xlane.f32.xlu1 %v909_v3 }
 0x42b   : > { %650 = vrot.lane.b32.xlu1 %v2952_v51, %s2651_s14  ;;  %v896_v5 = vpop.xlane.xlu0 %895 }
 0x42c   : > { %2378 = vrcp.f32 %v896_v5 }
 0x42d   : > { %v899_v6 = vpop.xlane.xlu1 %898 }
 0x42e   : > { %2380 = vrcp.f32 %v899_v6 }
 0x42f   : > { %2382 = vpow2.f32 %v892_v13 }
 0x430   : > { %647 = vrot.lane.b32.xlu0 %v2952_v51, %s2650_s23 }
 0x436   : > { %v2379_v7 = vpop.eup %2378 }
 0x437   : > { %v926_v10 = vmul.f32 %v2379_v7, %v2365_v35 }
 0x438   : > { %v2381_v8 = vpop.eup %2380 }
 0x439   : > { %v927_v11 = vmul.f32 %v2381_v8, %v2367_v37  ;;  %v2383_v14 = vpop.eup %2382 }
 0x43a   : > { %v915_v15 = vsel %vm845_vm2, %v2383_v14, 0.0 }
 0x43b   : > { %v934_v12 = vpack.c.bf16 %v927_v11, %v926_v10 }
 0x43d   : > { %2097 = vmatmul.mubr.msk.bf16.vlgmr.msra.gmra.mrb[12].mxu0 %vm845_vm2, %v934_v12 }
 0x43e   : > { %2108 = vmatprep.mubr.msk.bf16.mxu0 %vm2649_vm0, %v2647_v0 }
 0x44f   : > { %916 = vadd.xlane.f32.xlu1 %v915_v15 }
 0x460   : > { %653 = vrot.lane.b32.xlu1 %v2952_v51, %s2652_s17 }
 0x49e   : > { %v902_v16 = vpop.xlane.xlu0 %901 }
 0x49f   : > { %2384 = vrcp.f32 %v902_v16 }
 0x4a2   : > { %v905_v17 = vpop.xlane.xlu1 %904 }
 0x4a3   : > { %v908_v18 = vpop.xlane.xlu0 %907  ;;  %2386 = vrcp.f32 %v905_v17 }
 0x4a4   : > { %2388 = vrcp.f32 %v908_v18 }
 0x4a7   : > { %v914_v19 = vpop.xlane.xlu0 %913  ;;  %v911_v20 = vpop.xlane.xlu1 %910 }
 0x4a8   : > { %2390 = vrcp.f32 %v911_v20 }
 0x4a9   : > { %v2385_v21 = vpop.eup %2384  ;;  %2392 = vrcp.f32 %v914_v19 }
 0x4aa   : > { %v928_v51 = vmul.f32 %v2385_v21, %v2369_v55 }
 0x4ab   : > { %v648_v22 = vpop.permute.xlu0 %647  ;;  %v651_v23 = vpop.permute.xlu1 %650 }
 0x4ac   : > { %2101 = vmatpush3.bf16.msra.mxu1 %v648_v22  ;;  %2107 = vmatpush3.bf16.msra.mxu0 %v651_v23  ;;  %v2296_v22 = vld [vmem:[#allocation8] ss:$16 sps:$4 sm:$0xff]   ;;  %v2298_v23 = vld [vmem:[#allocation8 + $0x4] ss:$16 sps:$4 sm:$0xff]  }
 0x4ad   : > { %v2387_v24 = vpop.eup %2386  ;;  %2112 = vmatprep.subr.bf16.mxu1 %v2647_v0  ;;  %2118 = vmatprep.subr.bf16.mxu0 %v2647_v0 }
 0x4ae   : > { %v929_v25 = vmul.f32 %v2387_v24, %v2371_v57  ;;  %v2389_v28 = vpop.eup %2388  ;;  %v2299_v24 = vld [vmem:[#allocation8 + $0x8] ss:$16 sps:$4 sm:$0xff]  }
 0x4af   : > { %v930_v30 = vmul.f32 %v2389_v28, %v2373_v58  ;;  %v2291_v58 = vld [vmem:[#allocation7 + $0x18] sm:$0xff]   ;;  %v2302_v28 = vld [vmem:[#allocation8 + $0x20] ss:$16 sps:$4 sm:$0xff]  }
 0x4b0   : > { %v935_v27 = vpack.c.bf16 %v929_v25, %v928_v51  ;;  %v2301_v51 = vld [vmem:[#allocation8 + $0xc] ss:$16 sps:$4 sm:$0xff]   ;;  %v2304_v25 = vld [vmem:[#allocation8 + $0x24] ss:$16 sps:$4 sm:$0xff]  }
 0x4b2   : > { %2103 = vmatmul.mubr.msk.bf16.vlgmr.msra.gmra.mrb[12].mxu1 %vm845_vm2, %v935_v27  ;;  %v2391_v29 = vpop.eup %2390  ;;  %v2307_v27 = vld [vmem:[#allocation8 + $0x2c] ss:$16 sps:$4 sm:$0xff]  }
 0x4b3   : > { %2114 = vmatprep.mubr.msk.bf16.mxu1 %vm2649_vm0, %v2647_v0  ;;  %v931_v31 = vmul.f32 %v2391_v29, %v2377_v62  ;;  %v2393_v35 = vpop.eup %2392  ;;  %v2295_v62 = vld [vmem:[#allocation7 + $0x38] sm:$0xff]  }
 0x4b4   : > { %v932_v37 = vmul.f32 %v2393_v35, %v2998_v61  ;;  %v2294_v61 = vld [vmem:[#allocation7 + $0x30] sm:$0xff]   ;;  %v2305_v29 = vld [vmem:[#allocation8 + $0x28] ss:$16 sps:$4 sm:$0xff]  }
 0x4b5   : > { %v936_v32 = vpack.c.bf16 %v931_v31, %v930_v30  ;;  %v2310_v30 = vld [vmem:[#allocation8 + $0x44] ss:$16 sps:$4 sm:$0xff]   ;;  %v2313_v31 = vld [vmem:[#allocation8 + $0x4c] ss:$16 sps:$4 sm:$0xff]  }
 0x4b7   : > { %2109 = vmatmul.mubr.msk.bf16.vlgmr.msra.gmra.mrb[16].mxu0 %vm845_vm2, %v936_v32  ;;  %v2308_v32 = vld [vmem:[#allocation8 + $0x40] ss:$16 sps:$4 sm:$0xff]  }
 0x4b8   : > { %2134 = vmatprep.mubr.msk.bf16.mxu0 %vm2649_vm0, %v2647_v0  ;;  %2119 = vmatpush3.bf16.msra.mxu0 %v2288_v45  ;;  %v2323_v45 = vld [vmem:[#allocation8 + $0x88] ss:$16 sps:$4 sm:$0xff]  }
 0x4b9   : > { %2120 = vmatprep.subr.bf16.mxu0 %v2647_v0 }
 0x4bc   : > { %2121 = vmatpush3.bf16.msra.mxu0 %v2289_v48  ;;  %v2331_v48 = vld [vmem:[#allocation8 + $0xac] ss:$16 sps:$4 sm:$0xff]  }
 0x4bd   : > { %2122 = vmatprep.subr.bf16.mxu0 %v2647_v0 }
 0x4c0   : > { %2123 = vmatpush3.bf16.msra.mxu0 %v2290_v53  ;;  %v2337_v53 = vld [vmem:[#allocation8 + $0xcc] ss:$16 sps:$4 sm:$0xff]  }
 0x4c1   : > { %2124 = vmatprep.subr.bf16.mxu0 %v2647_v0 }
 0x4c4   : > { %2125 = vmatpush3.bf16.msra.mxu0 %v2291_v58  ;;  %v2338_v58 = vld [vmem:[#allocation8 + $0xe0] ss:$16 sps:$4 sm:$0xff]  }
 0x4c5   : > { %2126 = vmatprep.subr.bf16.mxu0 %v2647_v0 }
 0x4c8   : > { %2127 = vmatpush3.bf16.msra.mxu0 %v2292_v59  ;;  %v2341_v59 = vld [vmem:[#allocation8 + $0xe8] ss:$16 sps:$4 sm:$0xff]  }
 0x4c9   : > { %2128 = vmatprep.subr.bf16.mxu0 %v2647_v0 }
 0x4cc   : > { %2129 = vmatpush3.bf16.msra.mxu0 %v2293_v60 }
 0x4cd   : > { %2130 = vmatprep.subr.bf16.mxu0 %v2647_v0 }
 0x4d0   : > { %2131 = vmatpush3.bf16.msra.mxu0 %v2294_v61 }
 0x4d1   : > { %2132 = vmatprep.subr.bf16.mxu0 %v2647_v0 }
 0x4d4   : > { %2133 = vmatpush3.bf16.msra.mxu0 %v2295_v62 }
 0x4d5   : > { %1511 = vmatprep.subr.bf16.mxu0 %v2301_v51  ;;  %v2357_v51 = vld [vmem:[#allocation10 + $0x30] sm:$0xff]  }
 0x4dc   : > { %v917_v33 = vpop.xlane.xlu1 %916 }
 0x4dd   : > { %2394 = vrcp.f32 %v917_v33 }
 0x4e0   : > { %v654_v34 = vpop.permute.xlu1 %653 }
 0x4e1   : > { %2113 = vmatpush3.bf16.msra.mxu1 %v654_v34 }
 0x4e2   : > { %1468 = vmatprep.subr.bf16.mxu1 %v2298_v23  ;;  %v2355_v23 = vld [vmem:[#allocation10 + $0x28] sm:$0xff]  }
 0x4e7   : > { %v2395_v36 = vpop.eup %2394 }
 0x4e8   : > { %v933_v38 = vmul.f32 %v2395_v36, %v2383_v14 }
 0x4ea   : > { %v937_v39 = vpack.c.bf16 %v933_v38, %v932_v37 }
 0x4ec   : > { %2115 = vmatmul.mubr.msk.bf16.vlgmr.msra.gmra.mrb[16].mxu1 %vm845_vm2, %v937_v39 }
 0x4ed   : > { %1500 = vmatprep.mubr.bf16.mxu1 %v2648_v26  ;;  %1469 = vmatpush1.bf16.msra.mxu1 %v2296_v22  ;;  %v2354_v22 = vld [vmem:[#allocation10 + $0x68] sm:$0xff]  }
 0x4ee   : > { %1470 = vmatprep.subr.bf16.mxu1 %v2304_v25  ;;  %v2358_v25 = vld [vmem:[#allocation10 + $0x78] sm:$0xff]  }
 0x4f1   : > { %1471 = vmatpush1.bf16.msra.mxu1 %v2302_v28 }
 0x4f2   : > { %1472 = vmatprep.subr.bf16.mxu1 %v2310_v30 }
 0x4f5   : > { %1473 = vmatpush1.bf16.msra.mxu1 %v2308_v32 }
 0x510   : > { %v975_v40 = vpop.f32.mrb[12].mxu0 }
 0x511   : > { %v2098_v41 = vpop.f32.mrb[13].mxu0 }
 0x512   : > { %v978_v42 = vpop.f32.mrb[14].mxu0  ;;  %v2316_v41 = vld [vmem:[#allocation8 + $0x64] ss:$16 sps:$4 sm:$0xff]  }
 0x513   : > { %v2099_v43 = vpop.f32.mrb[15].mxu0  ;;  %1474 = vmatprep.subr.bf16.mxu1 %v2316_v41 }
 0x514   : > { %v2314_v43 = vld [vmem:[#allocation8 + $0x60] ss:$16 sps:$4 sm:$0xff]  }
 0x515   : > { %1475 = vmatpush1.bf16.msra.mxu1 %v2314_v43 }
 0x585   : > { %v1019_v44 = vpop.f32.mrb[12].mxu1 }
 0x586   : > { %v2104_v46 = vpop.f32.mrb[13].mxu1 }
 0x587   : > { %v1022_v47 = vpop.f32.mrb[14].mxu1  ;;  %v2325_v46 = vld [vmem:[#allocation8 + $0x8c] ss:$16 sps:$4 sm:$0xff]  }
 0x588   : > { %v2241_v49 = vpack.i.bf16 %v1022_v47, %v1019_v44  ;;  %v2105_v50 = vpop.f32.mrb[15].mxu1  ;;  %v2317_v44 = vld [vmem:[#allocation8 + $0x68] ss:$16 sps:$4 sm:$0xff]   ;;  %v2328_v47 = vld [vmem:[#allocation8 + $0xa4] ss:$16 sps:$4 sm:$0xff]  }
 0x589   : > { %v2329_v50 = vld [vmem:[#allocation8 + $0xa8] ss:$16 sps:$4 sm:$0xff]  }
 0x58a   : > { %2242 = vrot.lane.b32.xlu0 %v2241_v49, %s2652_s17  ;;  %v1063_v52 = vpop.f32.mrb[16].mxu0  ;;  %v2326_v49 = vld [vmem:[#allocation8 + $0xa0] ss:$16 sps:$4 sm:$0xff]  }
 0x58b   : > { %v2110_v54 = vpop.f32.mrb[17].mxu0 }
 0x58c   : > { %v1066_v55 = vpop.f32.mrb[18].mxu0  ;;  %v2332_v54 = vld [vmem:[#allocation8 + $0xc0] ss:$16 sps:$4 sm:$0xff]  }
 0x58d   : > { %v2246_v56 = vpack.i.bf16 %v1066_v55, %v1063_v52  ;;  %v2111_v57 = vpop.f32.mrb[19].mxu0  ;;  %v2334_v52 = vld [vmem:[#allocation8 + $0xc4] ss:$16 sps:$4 sm:$0xff]   ;;  %v2335_v55 = vld [vmem:[#allocation8 + $0xc8] ss:$16 sps:$4 sm:$0xff]  }
 0x58e   : > { %v2343_v57 = vld [vmem:[#allocation8 + $0xec] ss:$16 sps:$4 sm:$0xff]  }
 0x58f   : > { %2247 = vrot.lane.b32.xlu1 %v2246_v56, %s2651_s14  ;;  %v2340_v56 = vld [vmem:[#allocation8 + $0xe4] ss:$16 sps:$4 sm:$0xff]  }
 0x5bf   : > { %v1107_v63 = vpop.f32.mrb[16].mxu1 }
 0x5c0   : > { %v2116_v3 = vpop.f32.mrb[17].mxu1 }
 0x5c1   : > { %v1110_v4 = vpop.f32.mrb[18].mxu1 }
 0x5c2   : > { %v2251_v5 = vpack.i.bf16 %v1110_v4, %v1107_v63  ;;  %v2117_v6 = vpop.f32.mrb[19].mxu1 }
 0x5c4   : > { %2252 = vrot.lane.b32.xlu0 %v2251_v5, %s2650_s23  ;;  %s2564_s23 = scalar_lea.vmem %s2563_s9, 512 }
 0x5c5   : > { %p2566_p2 = scmp.lt.s32.totalorder %s2564_s23, %s2558_s28 }
 0x5c7   : > { %p2567_p1 = por %p2566_p2, %p2565_p12 }
 0x5c9   : > { %p2568_p13 = pnand %p2567_p1, %p2561_p7 }
 0x5fc   : > { %v2243_v7 = vpop.permute.xlu0 %2242 }
 0x5fd   : > { %v2245_v9 = vunpack.i.h.bf16 %v2243_v7  ;;  %v2244_v10 = vunpack.i.l.bf16 %v2243_v7 }
 0x5ff   : > { %v1138_v0 = vsel %vm656_vm1, %v975_v40, %v2244_v10  ;;  %v1139_v14 = vsel %vm656_vm1, %v978_v42, %v2245_v9  ;;  %v2319_v42 = vld [vmem:[#allocation8 + $0x6c] ss:$16 sps:$4 sm:$0xff]  }
 0x601   : > { %v2248_v8 = vpop.permute.xlu1 %2247 }
 0x602   : > { %v2250_v11 = vunpack.i.h.bf16 %v2248_v8  ;;  %v2249_v12 = vunpack.i.l.bf16 %v2248_v8  ;;  %v1938_v8 = vld [vmem:[%s3109_s2] ss:$0 sm:$0xff] }
 0x604   : > { %v1142_v17 = vsel %vm1140_vm3, %v1139_v14, %v2250_v11  ;;  %v1141_v18 = vsel %vm1140_vm3, %v1138_v0, %v2249_v12  ;;  %v2345_v0 = vld [vmem:[#allocation10] sm:$0xff]   ;;  %v2346_v14 = vld [vmem:[#allocation10 + $0x48] sm:$0xff]  }
 0x636   : > { %v2253_v13 = vpop.permute.xlu0 %2252 }
 0x637   : > { %v2255_v15 = vunpack.i.h.bf16 %v2253_v13  ;;  %v2254_v16 = vunpack.i.l.bf16 %v2253_v13  ;;  %v2344_v13 = vld [vmem:[#allocation10 + $0x40] sm:$0xff]  }
 0x639   : > { %v1144_v19 = vsel %vm1143_vm4, %v1141_v18, %v2254_v16  ;;  %v1145_v20 = vsel %vm1143_vm4, %v1142_v17, %v2255_v15  ;;  %v2347_v15 = vld [vmem:[#allocation10 + $0x8] sm:$0xff]   ;;  %v2348_v16 = vld [vmem:[#allocation10 + $0x50] sm:$0xff]   ;;  %v2350_v18 = vld [vmem:[#allocation10 + $0x58] sm:$0xff]  }
 0x63a   : > { %v1146_v21 = vpack.c.bf16 %v1145_v20, %v1144_v19  ;;  %v2349_v17 = vld [vmem:[#allocation10 + $0x10] sm:$0xff]   ;;  %v2351_v19 = vld [vmem:[#allocation10 + $0x18] sm:$0xff]   ;;  %v2352_v20 = vld [vmem:[#allocation10 + $0x60] sm:$0xff]  }
 0x63c   : > { %2135 = vmatmul.mubr.bf16.vlgmr.msra.gmra.mrb[20].mxu0 %v1146_v21  ;;  %v2353_v21 = vld [vmem:[#allocation10 + $0x20] sm:$0xff]  }
 0x63d   : > { %1543 = vmatprep.mubr.bf16.mxu0 %v2648_v26  ;;  %1512 = vmatpush1.bf16.msra.mxu0 %v2299_v24  ;;  %v2311_v26 = vld [vmem:[#allocation8 + $0x48] ss:$16 sps:$4 sm:$0xff]   ;;  %v2356_v24 = vld [vmem:[#allocation10 + $0x70] sm:$0xff]  }
 0x63e   : > { %1513 = vmatprep.subr.bf16.mxu0 %v2307_v27  ;;  %v2359_v27 = vld [vmem:[#allocation10 + $0x38] sm:$0xff]  }
 0x641   : > { %1514 = vmatpush1.bf16.msra.mxu0 %v2305_v29 }
 0x642   : > { %1515 = vmatprep.subr.bf16.mxu0 %v2313_v31 }
 0x645   : > { %1516 = vmatpush1.bf16.msra.mxu0 %v2311_v26 }
 0x646   : > { %1517 = vmatprep.subr.bf16.mxu0 %v2319_v42 }
 0x649   : > { %1518 = vmatpush1.bf16.msra.mxu0 %v2317_v44 }
 0x64a   : > { %1519 = vmatprep.subr.bf16.mxu0 %v2325_v46 }
 0x64d   : > { %1520 = vmatpush1.bf16.msra.mxu0 %v2323_v45 }
 0x64e   : > { %1521 = vmatprep.subr.bf16.mxu0 %v2331_v48 }
 0x651   : > { %1522 = vmatpush1.bf16.msra.mxu0 %v2329_v50 }
 0x652   : > { %1523 = vmatprep.subr.bf16.mxu0 %v2337_v53 }
 0x655   : > { %1524 = vmatpush1.bf16.msra.mxu0 %v2335_v55 }
 0x656   : > { %1525 = vmatprep.subr.bf16.mxu0 %v2343_v57 }
 0x659   : > { %1526 = vmatpush1.bf16.msra.mxu0 %v2341_v59 }
 0x70f   : > { %v1245_v33 = vpop.f32.mrb[20].mxu0 }
 0x710   : > { %v3039_v34 = vadd.f32 %v1245_v33, %v2923_v1  ;;  %v2136_v35 = vpop.f32.mrb[21].mxu0  ;;  %v2320_v1 = vld [vmem:[#allocation8 + $0x80] ss:$16 sps:$4 sm:$0xff]  }
 0x711   : > { %v1248_v36 = vpop.f32.mrb[22].mxu0 }
 0x712   : > { %v3042_v37 = vadd.f32 %v1248_v36, %v2925_v2  ;;  %v2137_v38 = vpop.f32.mrb[23].mxu0  ;;  %v1253_v39 = vmul.f32 %v3039_v34, %v3039_v34  ;;  %v2322_v2 = vld [vmem:[#allocation8 + $0x84] ss:$16 sps:$4 sm:$0xff]  }
 0x713   : > { %1476 = vmatprep.subr.bf16.mxu1 %v2322_v2 }
 0x714   : > { %1255 = vadd.xlane.f32.xlu1 %v1253_v39  ;;  %v1254_v40 = vmul.f32 %v3042_v37, %v3042_v37  ;;  %1477 = vmatpush1.bf16.msra.mxu1 %v2320_v1 }
 0x715   : > { %1478 = vmatprep.subr.bf16.mxu1 %v2328_v47 }
 0x716   : > { %1257 = vadd.xlane.f32.xlu0 %v1254_v40 }
 0x718   : > { %1479 = vmatpush1.bf16.msra.mxu1 %v2326_v49 }
 0x719   : > { %1480 = vmatprep.subr.bf16.mxu1 %v2334_v52 }
 0x71c   : > { %1481 = vmatpush1.bf16.msra.mxu1 %v2332_v54 }
 0x71d   : > { %1482 = vmatprep.subr.bf16.mxu1 %v2340_v56 }
 0x720   : > { %1483 = vmatpush1.bf16.msra.mxu1 %v2338_v58 }
 0x721   : > { %2028 = vmatprep.subr.bf16.mxu1 %v2344_v13 }
 0x7a1   : > { %v1256_v60 = vpop.xlane.xlu1 %1255 }
 0x7a2   : > { %v1259_v61 = vmul.f32 0.0078125, %v1256_v60 }
 0x7a3   : > { %v1258_v62 = vpop.xlane.xlu0 %1257 }
 0x7a4   : > { %v1261_v63 = vadd.f32 1e-06, %v1259_v61  ;;  %v1260_v3 = vmul.f32 0.0078125, %v1258_v62 }
 0x7a6   : > { %2396 = vrsqrt.f32 %v1261_v63  ;;  %v1262_v4 = vadd.f32 1e-06, %v1260_v3 }
 0x7a8   : > { %2398 = vrsqrt.f32 %v1262_v4 }
 0x7b0   : > { %v2397_v5 = vpop.eup %2396 }
 0x7b1   : > { %v1265_v6 = vmul.f32 %v2397_v5, %v3039_v34 }
 0x7b2   : > { %v2399_v7 = vpop.eup %2398 }
 0x7b3   : > { %v1266_v9 = vmul.f32 %v2399_v7, %v3042_v37  ;;  %v1273_v10 = vmul.f32 %v1938_v8, %v1265_v6 }
 0x7b5   : > { %v1274_v11 = vmul.f32 %v1938_v8, %v1266_v9 }
 0x7b7   : > { %v1275_v12 = vpack.c.bf16 %v1274_v11, %v1273_v10 }
 0x7b9   : > { %1501 = vmatmul.mubr.bf16.vlgmr.msra.gmra.mrb[20].mxu1 %v1275_v12  ;;  %1544 = vmatmul.mubr.bf16.vlgmr.msra.gmra.mrb[24].mxu0 %v1275_v12 }
 0x7ba   : > { %2029 = vmatpush3.bf16.msra.mxu1 %v2345_v0 }
 0x7bb   : > { %2030 = vmatprep.subr.bf16.mxu1 %v2346_v14 }
 0x7be   : > { %2031 = vmatpush3.bf16.msra.mxu1 %v2347_v15 }
 0x7bf   : > { %2032 = vmatprep.subr.bf16.mxu1 %v2348_v16 }
 0x7c2   : > { %2033 = vmatpush3.bf16.msra.mxu1 %v2349_v17 }
 0x7c3   : > { %2034 = vmatprep.subr.bf16.mxu1 %v2350_v18 }
 0x7c6   : > { %2035 = vmatpush3.bf16.msra.mxu1 %v2351_v19 }
 0x7c7   : > { %2036 = vmatprep.subr.bf16.mxu1 %v2352_v20 }
 0x7ca   : > { %2037 = vmatpush3.bf16.msra.mxu1 %v2353_v21 }
 0x7cb   : > { %2038 = vmatprep.subr.bf16.mxu1 %v2354_v22 }
 0x7ce   : > { %2039 = vmatpush3.bf16.msra.mxu1 %v2355_v23 }
 0x7cf   : > { %2040 = vmatprep.subr.bf16.mxu1 %v2356_v24 }
 0x7d2   : > { %2041 = vmatpush3.bf16.msra.mxu1 %v2357_v51 }
 0x7d3   : > { %2042 = vmatprep.subr.bf16.mxu1 %v2358_v25 }
 0x7d6   : > { %2043 = vmatpush3.bf16.msra.mxu1 %v2359_v27 }
 0x88c   : > { %v1502_v28 = vpop.f32.mrb[20].mxu1  ;;  %v1545_v29 = vpop.f32.mrb[24].mxu0 }
 0x88d   : > { %v1554_v30 = vsub.f32 0.0, %v1502_v28  ;;  %v1504_v31 = vpop.f32.mrb[21].mxu1  ;;  %v1547_v32 = vpop.f32.mrb[25].mxu0 }
 0x88e   : > { %v1555_v26 = vsub.f32 0.0, %v1504_v31  ;;  %v1506_v33 = vpop.f32.mrb[22].mxu1  ;;  %v1549_v35 = vpop.f32.mrb[26].mxu0 }
 0x88f   : > { %v1558_v36 = vmul.f32 1.442695, %v1554_v30  ;;  %v1556_v38 = vsub.f32 0.0, %v1506_v33  ;;  %v1508_v39 = vpop.f32.mrb[23].mxu1  ;;  %v1551_v40 = vpop.f32.mrb[27].mxu0 }
 0x890   : > { %v1560_v41 = vmul.f32 1.442695, %v1555_v26  ;;  %v1557_v42 = vsub.f32 0.0, %v1508_v39 }
 0x891   : > { %2400 = vpow2.f32 %v1558_v36  ;;  %v1562_v43 = vmul.f32 1.442695, %v1556_v38 }
 0x892   : > { %2402 = vpow2.f32 %v1560_v41  ;;  %v1564_v44 = vmul.f32 1.442695, %v1557_v42 }
 0x893   : > { %2404 = vpow2.f32 %v1562_v43 }
 0x894   : > { %2406 = vpow2.f32 %v1564_v44 }
 0x89b   : > { %v2401_v1 = vpop.eup %2400 }
 0x89c   : > { %v2403_v2 = vpop.eup %2402  ;;  %v1566_v45 = vadd.f32 1.0, %v2401_v1 }
 0x89d   : > { %v2405_v46 = vpop.eup %2404  ;;  %v1567_v47 = vadd.f32 1.0, %v2403_v2 }
 0x89e   : > { %v2407_v48 = vpop.eup %2406  ;;  %2408 = vrcp.f32 %v1566_v45  ;;  %v1568_v49 = vadd.f32 1.0, %v2405_v46 }
 0x89f   : > { %2410 = vrcp.f32 %v1567_v47  ;;  %v1569_v50 = vadd.f32 1.0, %v2407_v48 }
 0x8a0   : > { %2412 = vrcp.f32 %v1568_v49 }
 0x8a1   : > { %2414 = vrcp.f32 %v1569_v50 }
 0x8a8   : > { %v2409_v52 = vpop.eup %2408 }
 0x8a9   : > { %v2411_v53 = vpop.eup %2410  ;;  %v1574_v54 = vmul.f32 %v2409_v52, %v1502_v28 }
 0x8aa   : > { %v2413_v55 = vpop.eup %2412  ;;  %v1575_v56 = vmul.f32 %v2411_v53, %v1504_v31 }
 0x8ab   : > { %v2415_v57 = vpop.eup %2414  ;;  %v1578_v58 = vmul.f32 %v1574_v54, %v1545_v29  ;;  %v1576_v59 = vmul.f32 %v2413_v55, %v1506_v33 }
 0x8ac   : > { %v1579_v60 = vmul.f32 %v1575_v56, %v1547_v32  ;;  %v1577_v61 = vmul.f32 %v2415_v57, %v1508_v39 }
 0x8ad   : > { %v1580_v62 = vmul.f32 %v1576_v59, %v1549_v35 }
 0x8ae   : > { %v1581_v63 = vmul.f32 %v1577_v61, %v1551_v40 }
 0x8af   : > { %v1582_v3 = vpack.c.bf16 %v1580_v62, %v1578_v58 }
 0x8b0   : > { %v1583_v4 = vpack.c.bf16 %v1581_v63, %v1579_v60 }
 0x8b2   : > { %1744 = vmatprep.mubr.bf16.mxu1 %v1583_v4 }
 0x8b3   : > { %1745 = vmatmul.mubr.bf16.vlgmr.msra.gmra.mrb[24].mxu1 %v1582_v3 }
 0x986   : > { %v2044_v5 = vpop.f32.mrb[24].mxu1 }
 0x987   : > { %v2045_v6 = vpop.f32.mrb[25].mxu1 }
 0x988   : > { %v2046_v7 = vadd.f32 %v2045_v6, %v2044_v5  ;;  %v2047_v8 = vpop.f32.mrb[26].mxu1 }
 0x989   : > { %v2048_v9 = vpop.f32.mrb[27].mxu1 }
 0x98a   : > { %v1747_v10 = vadd.f32 %v2046_v7, %v3039_v34  ;;  %v2049_v11 = vadd.f32 %v2048_v9, %v2047_v8 }
 0x98c   : > { %1753 = vst [vmem:[%s354_s11] sm:$0xff] %v1747_v10  ;;  %v1750_v12 = vadd.f32 %v2049_v11, %v3042_v37 }
 0x98e   : > { %1754 = vst [vmem:[%s354_s11 + $0x8] sm:$0xff] %v1750_v12 }
 0x98f   : > { %2571 = shalt.err (!%p2568_p13)
}
 0x990   : > { %s2572_s14 = scalar_lea.hbm %s3062_s21, 256  ;;  %s2576_s16 = scalar_lea.hbm %s3114_s7, 512 }
 0x991   : > { %p2573_p9 = scmp.ne.s32.totalorder %s3062_s21, %s2572_s14  ;;  %p2577_p4 = scmp.lt.u32.totalorder %s3062_s21, %s3114_s7 }
 0x992   : > { %p2578_p8 = scmp.lt.u32.totalorder %s2576_s16, %s2572_s14  ;;  %p2580_p3 = scmp.lt.u32.totalorder %s2572_s14, %s3062_s21 }
 0x993   : > { %p2574_p0 = pnand %p2573_p9, %p2852_p10 }
 0x994   : > { %p2579_p6 = por %p2578_p8, %p2577_p4 }
 0x995   : > { %p2575_p11 = pneg %p2574_p0 }
 0x996   : > { %p2581_p5 = por %p2580_p3, %p2579_p6 }
 0x998   : > { %p2582_p7 = pnand %p2581_p5, %p2575_p11 }
 0x99a   : > { %2585 = shalt.err (!%p2582_p7)
}
 0x99b   : > { %s2654_s12 = smov 128   ;;  %s2655_s10 = smov 8  }
 0x99c   : > { %2156 = dma.vmem_to_hbm [thread:$0]  (%p2852_p10), %s3057_s15, 256, %s3062_s21, %s1756_s29, %s2654_s12, %s2654_s12, %s2655_s10  }
 0x99d PF: > { %s1784_s28 = sand.u32 1, %s2620_s24   ;;  %p3134_p12 = scmp.ne.s32.totalorder %s3120_s8, 0 }
 0x99e   : > { %p3135_p2 = scmp.ge.s32.totalorder %s2632_s27, 2  ;;  %s1785_s30 = scalar_lea.sflag [#allocation4], %s1784_s28 }
 0x9a0   : > { %p2176_p1 = pnand %p3135_p2, %p3134_p12 }
 0x9a2   : > { %2615 = dma.done.wait (!%p2176_p1), %s1785_s30, 256  }
 0x9a3   : > { %2617 = vsyncadd (!%p2176_p1), %s1785_s30, 4294967040  ;;  %p22_p13 = scmp.ge.s32.totalorder %s2842_s20, 4   ;;  %s3136_s24 = smov %s2624_s25 }
 0x9a4   : > { %s3137_s25 = smov %s2628_s26  ;;  %s3138_s26 = smov %s2858_s19 }
 0x9a5   : > { %s3139_s27 = smov %s2842_s20  ;;  %24 = sbr.rel (!%p22_p13) target bundleno = 9 (0x9), region = 109 }
 0x9ac   :  { %1790 = vsyncpa [#allocation3], 1 }
 0x9ad   :  { %1792 = vsyncpa [#allocation3 + $0x1], 1 }
 0x9ae   :  { %1793 = vsyncpa [#allocation6], 1 }
 0x9af   :  { %1794 = vsyncpa [#allocation9], 1 }
 0x9b0   :  { %1795 = vsyncpa [#allocation4], 1 }
 0x9b1   :  { %1797 = vsyncpa [#allocation4 + $0x1], 1 }

</bundles_post_ra>
